<compile_context>
chip_gen: v7x
topology: tpu7x:2x2x1
jax: 0.10.0
libtpu: 0.0.40
codegen_flags: <defaults>
</compile_context>

<pallas_src>
import functools

import jax
import jax.numpy as jnp
from jax import lax
from jax.experimental import pallas as pl
from jax.experimental.pallas import tpu as pltpu

n_actions = 4


# ---------------------------------------------------------------------------
# Fused Pallas kernel: conv (im2col matmul) + encoder fc + dynamics head
# ---------------------------------------------------------------------------
def _dynamics_fused_kernel(
    patches_ref, aux_ref,
    wconv_ref, bconv_ref,
    wfcm_ref, bfc_ref,
    w1e_ref, w1a_ref, b1_ref,
    w2_ref, b2_ref,
    wskip_ref,
    wout_ref, bout_ref,
    o_ref,
    *, batch, windows, out_channels,
):
    m_rows = batch * windows

    # --- encoder conv: one MXU matmul over im2col patches + bias + ReLU ------
    conv = jnp.dot(patches_ref[...], wconv_ref[...],
                   preferred_element_type=jnp.float32) + bconv_ref[...]
    conv = jnp.maximum(conv, 0.0)                               # (M, OC)

    # --- encoder fc without an in-kernel flatten ------------------------------
    # H[m, f] = sum_oc conv[m, oc] * WfcM[oc, m, f]   (per-channel VPU FMAs)
    h_fc = conv[:, 0:1] * wfcm_ref[0]
    for oc in range(1, out_channels):
        h_fc = h_fc + conv[:, oc:oc + 1] * wfcm_ref[oc]          # (M, F)

    # emb[b, :] = sum of H rows belonging to batch b  -> 0/1 selection matmul
    rows = lax.broadcasted_iota(jnp.int32, (batch, m_rows), 0)
    cols = lax.broadcasted_iota(jnp.int32, (batch, m_rows), 1)
    sel = jnp.where((cols >= rows * windows) & (cols < (rows + 1) * windows),
                    1.0, 0.0)                                    # (B, M) f32
    emb = jnp.dot(sel, h_fc, preferred_element_type=jnp.float32) + bfc_ref[...]

    # --- dynamics head ---------------------------------------------------------
    aux = aux_ref[...]
    # trunk layer 1: concat(emb, aux) @ W1 + b1 == emb @ W1e + aux @ W1a + b1
    h1 = (jnp.dot(emb, w1e_ref[...], preferred_element_type=jnp.float32)
          + jnp.dot(aux, w1a_ref[...], preferred_element_type=jnp.float32)
          + b1_ref[...])
    h1 = jnp.maximum(h1, 0.0)
    # trunk layer 2 + skip connection (independent dots overlap on the MXU)
    h2 = jnp.dot(h1, w2_ref[...], preferred_element_type=jnp.float32) + b2_ref[...]
    skip = jnp.dot(emb, wskip_ref[...], preferred_element_type=jnp.float32)
    h3 = jnp.maximum(h2 + skip, 0.0)
    # output_linear
    out = jnp.dot(h3, wout_ref[...], preferred_element_type=jnp.float32) + bout_ref[...]
    o_ref[...] = out.astype(o_ref.dtype)


# ---------------------------------------------------------------------------
# Wrapper (jit-fused XLA glue + the single pallas_call)
# ---------------------------------------------------------------------------
def _im2col_nhwc(x_nhwc, kh, kw, stride):
    """(B,H,W,C) -> (B*OH*OW, C*KH*KW) patches; k order = c*KH*KW + di*KW + dj."""
    B, H, W, C = x_nhwc.shape
    oh = (H - kh) // stride + 1
    ow = (W - kw) // stride + 1
    cols = []
    for di in range(kh):
        for dj in range(kw):
            cols.append(
                x_nhwc[:, di:di + stride * oh:stride, dj:dj + stride * ow:stride, :])
    p = jnp.stack(cols, axis=4)                # (B, OH, OW, C, KH*KW)
    return p.reshape(B * oh * ow, C * kh * kw), oh, ow


@functools.partial(jax.jit, static_argnames=("detach_encoder",))
def dynamics_model_forward(obs, aux, enc_params, dyn_params, detach_encoder=False):
    # TODO(synk): detach_encoder only stops gradients in PyTorch; forward values
    # are identical, so it is a no-op here.
    del detach_encoder
    B, C, H, W = obs.shape
    x = jnp.transpose(obs, (0, 2, 3, 1))       # NCHW -> NHWC (tiny, fused by XLA)
    patches, oh, ow = _im2col_nhwc(x, 3, 3, stride=2)
    # TODO(synk): im2col stays as jit-fused XLA glue; the strided window gather
    # is a lane/sublane relayout with no robust in-kernel Mosaic form here.

    windows = oh * ow
    oc = enc_params["w_conv"].shape[1]
    f_dim = enc_params["wfc_m"].shape[2]
    z_dim = dyn_params["w_out"].shape[1]
    assert enc_params["wfc_m"].shape == (oc, B * windows, f_dim)

    kernel = functools.partial(
        _dynamics_fused_kernel, batch=B, windows=windows, out_channels=oc)

    args = (
        patches, aux,
        enc_params["w_conv"], enc_params["b_conv"].reshape(1, -1),
        enc_params["wfc_m"], enc_params["b_fc"].reshape(1, -1),
        dyn_params["w1_emb"], dyn_params["w1_aux"], dyn_params["b1"].reshape(1, -1),
        dyn_params["w2"], dyn_params["b2"].reshape(1, -1),
        dyn_params["w_skip"],
        dyn_params["w_out"], dyn_params["b_out"].reshape(1, -1),
    )
    return pl.pallas_call(
        kernel,
        out_shape=jax.ShapeDtypeStruct((B, z_dim), jnp.float32),
        in_specs=[pl.BlockSpec(memory_space=pltpu.VMEM)] * len(args),
        out_specs=pl.BlockSpec(memory_space=pltpu.VMEM),
        # TODO(synk): for large batches add a grid over the B*OH*OW axis with
        # dimension_semantics=("parallel",) (v7x dual TensorCores) and size the
        # tiles against v7x's 64 MiB VMEM; at B=2 a single block is optimal.
    )(*args)


# ---------------------------------------------------------------------------
# Parameter construction (synthetic encoder + dynamics head weights)
# ---------------------------------------------------------------------------
def init_params(key, *, obs_shape, feature_dim, hidden_dim, z_dim, out_channels=8):
    B, C, H, W = obs_shape
    oh = (H - 3) // 2 + 1
    ow = (W - 3) // 2 + 1
    p_windows = oh * ow
    flat_dim = out_channels * p_windows        # NCHW (oc-major) flatten

    ks = jax.random.split(key, 10)
    s = 0.1  # deterministic small-scale init (synthetic weights, not a checkpoint)
    w_conv = s * jax.random.normal(ks[0], (C * 3 * 3, out_channels), jnp.float32)
    b_conv = s * jax.random.normal(ks[1], (out_channels,), jnp.float32)
    w_fc = s * jax.random.normal(ks[2], (flat_dim, feature_dim), jnp.float32)
    b_fc = s * jax.random.normal(ks[3], (feature_dim,), jnp.float32)

    # Kernel-friendly fc weight:  wfc_m[oc, b*P + p, f] = w_fc[oc*P + p, f]
    wfc_m = jnp.tile(w_fc.reshape(out_channels, p_windows, feature_dim), (1, B, 1))

    enc_params = {
        "w_conv": w_conv, "b_conv": b_conv,
        "w_fc": w_fc, "b_fc": b_fc,            # canonical layout (reference path)
        "wfc_m": wfc_m,                        # pre-tiled layout for the kernel
    }
    dyn_params = {
        # trunk Linear(feature_dim + n_actions, hidden_dim), split into two blocks
        "w1_emb": s * jax.random.normal(ks[4], (feature_dim, hidden_dim), jnp.float32),
        "w1_aux": s * jax.random.normal(ks[5], (n_actions, hidden_dim), jnp.float32),
        "b1": s * jax.random.normal(ks[6], (hidden_dim,), jnp.float32),
        # trunk Linear(hidden_dim, hidden_dim)
        "w2": s * jax.random.normal(ks[7], (hidden_dim, hidden_dim), jnp.float32),
        "b2": jnp.zeros((hidden_dim,), jnp.float32),
        # W parameter: torch.rand(feature_dim, hidden_dim) -> uniform [0, 1)
        "w_skip": jax.random.uniform(ks[8], (feature_dim, hidden_dim), jnp.float32),
        # output_linear Linear(hidden_dim, z_dim)
        "w_out": s * jax.random.normal(ks[9], (hidden_dim, z_dim), jnp.float32),
        "b_out": jnp.zeros((z_dim,), jnp.float32),
    }
    return enc_params, dyn_params


# ---------------------------------------------------------------------------
# Pure-JAX reference (no Pallas) — identical semantics, for validation
# ---------------------------------------------------------------------------
def reference_forward(obs, aux, enc_params, dyn_params):
    hi = lax.Precision.HIGHEST
    B, C, H, W = obs.shape
    x = jnp.transpose(obs, (0, 2, 3, 1))
    patches, oh, ow = _im2col_nhwc(x, 3, 3, stride=2)
    oc = enc_params["w_conv"].shape[1]
    conv = jnp.maximum(
        jnp.dot(patches, enc_params["w_conv"], precision=hi) + enc_params["b_conv"], 0.0)
    # NCHW-style flatten: (B, P, OC) -> (B, OC, P) -> (B, OC*P)
    flat = jnp.transpose(conv.reshape(B, oh * ow, oc), (0, 2, 1)).reshape(B, oc * oh * ow)
    emb = jnp.dot(flat, enc_params["w_fc"], precision=hi) + enc_params["b_fc"]

    cat = jnp.concatenate([emb, aux], axis=1)
    w1 = jnp.concatenate([dyn_params["w1_emb"], dyn_params["w1_aux"]], axis=0)
    h = jnp.maximum(jnp.dot(cat, w1, precision=hi) + dyn_params["b1"], 0.0)
    h = jnp.dot(h, dyn_params["w2"], precision=hi) + dyn_params["b2"]
    skip = jnp.dot(emb, dyn_params["w_skip"], precision=hi)
    h = jnp.maximum(h + skip, 0.0)
    return jnp.dot(h, dyn_params["w_out"], precision=hi) + dyn_params["b_out"]


if __name__ == "__main__":
    B, C, H, W = 2, 4, 16, 16
    feature_dim = 32
    hidden_dim = 32
    z_dim = 32

    key = jax.random.PRNGKey(0)
    k_obs, k_aux, k_par = jax.random.split(key, 3)

    obs = jax.random.normal(k_obs, (B, C, H, W), jnp.float32)   # NCHW like PyTorch
    aux = jax.random.normal(k_aux, (B, n_actions), jnp.float32)

    enc_params, dyn_params = init_params(
        k_par, obs_shape=(B, C, H, W),
        feature_dim=feature_dim, hidden_dim=hidden_dim, z_dim=z_dim,
    )

    out = dynamics_model_forward(obs, aux, enc_params, dyn_params)
    out = jax.block_until_ready(out)
    assert out.shape == (B, z_dim), out.shape

    ref = reference_forward(obs, aux, enc_params, dyn_params)
    assert bool(jnp.allclose(out, ref, rtol=1e-2, atol=1e-2)), (
        "Pallas forward does not match pure-JAX reference")

    print("KERNEL_OK")
</pallas_src>

<mosaic_0001>
module attributes {stable_mosaic.version = 11 : i64} {
  func.func @_dynamics_fused_kernel(%arg0: memref<98x36xf32, #tpu.memory_space<vmem>>, %arg1: memref<2x4xf32, #tpu.memory_space<vmem>>, %arg2: memref<36x8xf32, #tpu.memory_space<vmem>>, %arg3: memref<1x8xf32, #tpu.memory_space<vmem>>, %arg4: memref<8x98x32xf32, #tpu.memory_space<vmem>>, %arg5: memref<1x32xf32, #tpu.memory_space<vmem>>, %arg6: memref<32x32xf32, #tpu.memory_space<vmem>>, %arg7: memref<4x32xf32, #tpu.memory_space<vmem>>, %arg8: memref<1x32xf32, #tpu.memory_space<vmem>>, %arg9: memref<32x32xf32, #tpu.memory_space<vmem>>, %arg10: memref<1x32xf32, #tpu.memory_space<vmem>>, %arg11: memref<32x32xf32, #tpu.memory_space<vmem>>, %arg12: memref<32x32xf32, #tpu.memory_space<vmem>>, %arg13: memref<1x32xf32, #tpu.memory_space<vmem>>, %arg14: memref<2x32xf32, #tpu.memory_space<vmem>>) attributes {dimension_semantics = [], scalar_prefetch = 0 : i64, scratch_operands = 0 : i64, tpu.core_type = #tpu.core_type<tc>} {
    %c0 = arith.constant 0 : index
    %c0_0 = arith.constant 0 : index
    %0 = vector.load %arg0[%c0, %c0_0] : memref<98x36xf32, #tpu.memory_space<vmem>>, vector<98x36xf32>
    %c0_1 = arith.constant 0 : index
    %c0_2 = arith.constant 0 : index
    %1 = vector.load %arg2[%c0_1, %c0_2] : memref<36x8xf32, #tpu.memory_space<vmem>>, vector<36x8xf32>
    %cst = arith.constant dense<0.000000e+00> : vector<98x8xf32>
    %2 = tpu.matmul %0, %1, %cst {dimension_numbers = #tpu.dot_dimension_numbers<[1], [0], [0], [1], [0, 0, 1, 1], [], []>} : vector<98x36xf32>, vector<36x8xf32>, vector<98x8xf32> -> vector<98x8xf32>
    %c0_3 = arith.constant 0 : index
    %c0_4 = arith.constant 0 : index
    %3 = vector.load %arg3[%c0_3, %c0_4] : memref<1x8xf32, #tpu.memory_space<vmem>>, vector<1x8xf32>
    %4 = vector.broadcast %3 : vector<1x8xf32> to vector<98x8xf32>
    %5 = arith.addf %2, %4 : vector<98x8xf32>
    %cst_5 = arith.constant 0.000000e+00 : f32
    %6 = vector.broadcast %cst_5 : f32 to vector<98x8xf32>
    %7 = arith.maximumf %5, %6 : vector<98x8xf32>
    %8 = vector.extract_strided_slice %7 {offsets = [0, 0], sizes = [98, 1], strides = [1, 1]} : vector<98x8xf32> to vector<98x1xf32>
    %c0_6 = arith.constant 0 : index
    %c0_7 = arith.constant 0 : index
    %c0_8 = arith.constant 0 : index
    %9 = vector.load %arg4[%c0_6, %c0_7, %c0_8] : memref<8x98x32xf32, #tpu.memory_space<vmem>>, vector<1x98x32xf32>
    %10 = vector.shape_cast %9 : vector<1x98x32xf32> to vector<98x32xf32>
    %11 = vector.broadcast %8 : vector<98x1xf32> to vector<98x32xf32>
    %12 = arith.mulf %11, %10 : vector<98x32xf32>
    %13 = vector.extract_strided_slice %7 {offsets = [0, 1], sizes = [98, 1], strides = [1, 1]} : vector<98x8xf32> to vector<98x1xf32>
    %c1 = arith.constant 1 : index
    %c0_9 = arith.constant 0 : index
    %c0_10 = arith.constant 0 : index
    %14 = vector.load %arg4[%c1, %c0_9, %c0_10] : memref<8x98x32xf32, #tpu.memory_space<vmem>>, vector<1x98x32xf32>
    %15 = vector.shape_cast %14 : vector<1x98x32xf32> to vector<98x32xf32>
    %16 = vector.broadcast %13 : vector<98x1xf32> to vector<98x32xf32>
    %17 = arith.mulf %16, %15 : vector<98x32xf32>
    %18 = arith.addf %12, %17 : vector<98x32xf32>
    %19 = vector.extract_strided_slice %7 {offsets = [0, 2], sizes = [98, 1], strides = [1, 1]} : vector<98x8xf32> to vector<98x1xf32>
    %c2 = arith.constant 2 : index
    %c0_11 = arith.constant 0 : index
    %c0_12 = arith.constant 0 : index
    %20 = vector.load %arg4[%c2, %c0_11, %c0_12] : memref<8x98x32xf32, #tpu.memory_space<vmem>>, vector<1x98x32xf32>
    %21 = vector.shape_cast %20 : vector<1x98x32xf32> to vector<98x32xf32>
    %22 = vector.broadcast %19 : vector<98x1xf32> to vector<98x32xf32>
    %23 = arith.mulf %22, %21 : vector<98x32xf32>
    %24 = arith.addf %18, %23 : vector<98x32xf32>
    %25 = vector.extract_strided_slice %7 {offsets = [0, 3], sizes = [98, 1], strides = [1, 1]} : vector<98x8xf32> to vector<98x1xf32>
    %c3 = arith.constant 3 : index
    %c0_13 = arith.constant 0 : index
    %c0_14 = arith.constant 0 : index
    %26 = vector.load %arg4[%c3, %c0_13, %c0_14] : memref<8x98x32xf32, #tpu.memory_space<vmem>>, vector<1x98x32xf32>
    %27 = vector.shape_cast %26 : vector<1x98x32xf32> to vector<98x32xf32>
    %28 = vector.broadcast %25 : vector<98x1xf32> to vector<98x32xf32>
    %29 = arith.mulf %28, %27 : vector<98x32xf32>
    %30 = arith.addf %24, %29 : vector<98x32xf32>
    %31 = vector.extract_strided_slice %7 {offsets = [0, 4], sizes = [98, 1], strides = [1, 1]} : vector<98x8xf32> to vector<98x1xf32>
    %c4 = arith.constant 4 : index
    %c0_15 = arith.constant 0 : index
    %c0_16 = arith.constant 0 : index
    %32 = vector.load %arg4[%c4, %c0_15, %c0_16] : memref<8x98x32xf32, #tpu.memory_space<vmem>>, vector<1x98x32xf32>
    %33 = vector.shape_cast %32 : vector<1x98x32xf32> to vector<98x32xf32>
    %34 = vector.broadcast %31 : vector<98x1xf32> to vector<98x32xf32>
    %35 = arith.mulf %34, %33 : vector<98x32xf32>
    %36 = arith.addf %30, %35 : vector<98x32xf32>
    %37 = vector.extract_strided_slice %7 {offsets = [0, 5], sizes = [98, 1], strides = [1, 1]} : vector<98x8xf32> to vector<98x1xf32>
    %c5 = arith.constant 5 : index
    %c0_17 = arith.constant 0 : index
    %c0_18 = arith.constant 0 : index
    %38 = vector.load %arg4[%c5, %c0_17, %c0_18] : memref<8x98x32xf32, #tpu.memory_space<vmem>>, vector<1x98x32xf32>
    %39 = vector.shape_cast %38 : vector<1x98x32xf32> to vector<98x32xf32>
    %40 = vector.broadcast %37 : vector<98x1xf32> to vector<98x32xf32>
    %41 = arith.mulf %40, %39 : vector<98x32xf32>
    %42 = arith.addf %36, %41 : vector<98x32xf32>
    %43 = vector.extract_strided_slice %7 {offsets = [0, 6], sizes = [98, 1], strides = [1, 1]} : vector<98x8xf32> to vector<98x1xf32>
    %c6 = arith.constant 6 : index
    %c0_19 = arith.constant 0 : index
    %c0_20 = arith.constant 0 : index
    %44 = vector.load %arg4[%c6, %c0_19, %c0_20] : memref<8x98x32xf32, #tpu.memory_space<vmem>>, vector<1x98x32xf32>
    %45 = vector.shape_cast %44 : vector<1x98x32xf32> to vector<98x32xf32>
    %46 = vector.broadcast %43 : vector<98x1xf32> to vector<98x32xf32>
    %47 = arith.mulf %46, %45 : vector<98x32xf32>
    %48 = arith.addf %42, %47 : vector<98x32xf32>
    %49 = vector.extract_strided_slice %7 {offsets = [0, 7], sizes = [98, 1], strides = [1, 1]} : vector<98x8xf32> to vector<98x1xf32>
    %c7 = arith.constant 7 : index
    %c0_21 = arith.constant 0 : index
    %c0_22 = arith.constant 0 : index
    %50 = vector.load %arg4[%c7, %c0_21, %c0_22] : memref<8x98x32xf32, #tpu.memory_space<vmem>>, vector<1x98x32xf32>
    %51 = vector.shape_cast %50 : vector<1x98x32xf32> to vector<98x32xf32>
    %52 = vector.broadcast %49 : vector<98x1xf32> to vector<98x32xf32>
    %53 = arith.mulf %52, %51 : vector<98x32xf32>
    %54 = arith.addf %48, %53 : vector<98x32xf32>
    %55 = tpu.iota {dimensions = array<i32: 0>} : vector<2x98xi32>
    %56 = tpu.iota {dimensions = array<i32: 1>} : vector<2x98xi32>
    %c49_i32 = arith.constant 49 : i32
    %57 = vector.broadcast %c49_i32 : i32 to vector<2x98xi32>
    %58 = arith.muli %55, %57 : vector<2x98xi32>
    %59 = arith.cmpi sge, %56, %58 : vector<2x98xi32>
    %c1_i32 = arith.constant 1 : i32
    %60 = vector.broadcast %c1_i32 : i32 to vector<2x98xi32>
    %61 = arith.addi %55, %60 : vector<2x98xi32>
    %c49_i32_23 = arith.constant 49 : i32
    %62 = vector.broadcast %c49_i32_23 : i32 to vector<2x98xi32>
    %63 = arith.muli %61, %62 : vector<2x98xi32>
    %64 = arith.cmpi slt, %56, %63 : vector<2x98xi32>
    %65 = arith.andi %59, %64 : vector<2x98xi1>
    %cst_24 = arith.constant 1.000000e+00 : f32
    %cst_25 = arith.constant 0.000000e+00 : f32
    %66 = vector.broadcast %cst_24 : f32 to vector<2x98xf32>
    %67 = vector.broadcast %cst_25 : f32 to vector<2x98xf32>
    %68 = arith.select %65, %66, %67 : vector<2x98xi1>, vector<2x98xf32>
    %cst_26 = arith.constant dense<0.000000e+00> : vector<2x32xf32>
    %69 = tpu.matmul %68, %54, %cst_26 {dimension_numbers = #tpu.dot_dimension_numbers<[1], [0], [0], [1], [0, 0, 1, 1], [], []>} : vector<2x98xf32>, vector<98x32xf32>, vector<2x32xf32> -> vector<2x32xf32>
    %c0_27 = arith.constant 0 : index
    %c0_28 = arith.constant 0 : index
    %70 = vector.load %arg5[%c0_27, %c0_28] : memref<1x32xf32, #tpu.memory_space<vmem>>, vector<1x32xf32>
    %71 = vector.broadcast %70 : vector<1x32xf32> to vector<2x32xf32>
    %72 = arith.addf %69, %71 : vector<2x32xf32>
    %c0_29 = arith.constant 0 : index
    %c0_30 = arith.constant 0 : index
    %73 = vector.load %arg1[%c0_29, %c0_30] : memref<2x4xf32, #tpu.memory_space<vmem>>, vector<2x4xf32>
    %c0_31 = arith.constant 0 : index
    %c0_32 = arith.constant 0 : index
    %74 = vector.load %arg6[%c0_31, %c0_32] : memref<32x32xf32, #tpu.memory_space<vmem>>, vector<32x32xf32>
    %cst_33 = arith.constant dense<0.000000e+00> : vector<2x32xf32>
    %75 = tpu.matmul %72, %74, %cst_33 {dimension_numbers = #tpu.dot_dimension_numbers<[1], [0], [0], [1], [0, 0, 1, 1], [], []>} : vector<2x32xf32>, vector<32x32xf32>, vector<2x32xf32> -> vector<2x32xf32>
    %c0_34 = arith.constant 0 : index
    %c0_35 = arith.constant 0 : index
    %76 = vector.load %arg7[%c0_34, %c0_35] : memref<4x32xf32, #tpu.memory_space<vmem>>, vector<4x32xf32>
    %cst_36 = arith.constant dense<0.000000e+00> : vector<2x32xf32>
    %77 = tpu.matmul %73, %76, %cst_36 {dimension_numbers = #tpu.dot_dimension_numbers<[1], [0], [0], [1], [0, 0, 1, 1], [], []>} : vector<2x4xf32>, vector<4x32xf32>, vector<2x32xf32> -> vector<2x32xf32>
    %78 = arith.addf %75, %77 : vector<2x32xf32>
    %c0_37 = arith.constant 0 : index
    %c0_38 = arith.constant 0 : index
    %79 = vector.load %arg8[%c0_37, %c0_38] : memref<1x32xf32, #tpu.memory_space<vmem>>, vector<1x32xf32>
    %80 = vector.broadcast %79 : vector<1x32xf32> to vector<2x32xf32>
    %81 = arith.addf %78, %80 : vector<2x32xf32>
    %cst_39 = arith.constant 0.000000e+00 : f32
    %82 = vector.broadcast %cst_39 : f32 to vector<2x32xf32>
    %83 = arith.maximumf %81, %82 : vector<2x32xf32>
    %c0_40 = arith.constant 0 : index
    %c0_41 = arith.constant 0 : index
    %84 = vector.load %arg9[%c0_40, %c0_41] : memref<32x32xf32, #tpu.memory_space<vmem>>, vector<32x32xf32>
    %cst_42 = arith.constant dense<0.000000e+00> : vector<2x32xf32>
    %85 = tpu.matmul %83, %84, %cst_42 {dimension_numbers = #tpu.dot_dimension_numbers<[1], [0], [0], [1], [0, 0, 1, 1], [], []>} : vector<2x32xf32>, vector<32x32xf32>, vector<2x32xf32> -> vector<2x32xf32>
    %c0_43 = arith.constant 0 : index
    %c0_44 = arith.constant 0 : index
    %86 = vector.load %arg10[%c0_43, %c0_44] : memref<1x32xf32, #tpu.memory_space<vmem>>, vector<1x32xf32>
    %87 = vector.broadcast %86 : vector<1x32xf32> to vector<2x32xf32>
    %88 = arith.addf %85, %87 : vector<2x32xf32>
    %c0_45 = arith.constant 0 : index
    %c0_46 = arith.constant 0 : index
    %89 = vector.load %arg11[%c0_45, %c0_46] : memref<32x32xf32, #tpu.memory_space<vmem>>, vector<32x32xf32>
    %cst_47 = arith.constant dense<0.000000e+00> : vector<2x32xf32>
    %90 = tpu.matmul %72, %89, %cst_47 {dimension_numbers = #tpu.dot_dimension_numbers<[1], [0], [0], [1], [0, 0, 1, 1], [], []>} : vector<2x32xf32>, vector<32x32xf32>, vector<2x32xf32> -> vector<2x32xf32>
    %91 = arith.addf %88, %90 : vector<2x32xf32>
    %cst_48 = arith.constant 0.000000e+00 : f32
    %92 = vector.broadcast %cst_48 : f32 to vector<2x32xf32>
    %93 = arith.maximumf %91, %92 : vector<2x32xf32>
    %c0_49 = arith.constant 0 : index
    %c0_50 = arith.constant 0 : index
    %94 = vector.load %arg12[%c0_49, %c0_50] : memref<32x32xf32, #tpu.memory_space<vmem>>, vector<32x32xf32>
    %cst_51 = arith.constant dense<0.000000e+00> : vector<2x32xf32>
    %95 = tpu.matmul %93, %94, %cst_51 {dimension_numbers = #tpu.dot_dimension_numbers<[1], [0], [0], [1], [0, 0, 1, 1], [], []>} : vector<2x32xf32>, vector<32x32xf32>, vector<2x32xf32> -> vector<2x32xf32>
    %c0_52 = arith.constant 0 : index
    %c0_53 = arith.constant 0 : index
    %96 = vector.load %arg13[%c0_52, %c0_53] : memref<1x32xf32, #tpu.memory_space<vmem>>, vector<1x32xf32>
    %97 = vector.broadcast %96 : vector<1x32xf32> to vector<2x32xf32>
    %98 = arith.addf %95, %97 : vector<2x32xf32>
    %c0_54 = arith.constant 0 : index
    %c0_55 = arith.constant 0 : index
    %99 = vector.load %arg14[%c0_54, %c0_55] : memref<2x32xf32, #tpu.memory_space<vmem>>, vector<2x32xf32>
    tpu.vector_store %arg14[%c0_54, %c0_55], %98 {strides = array<i32>} : memref<2x32xf32, #tpu.memory_space<vmem>>, vector<2x32xf32>,
    return
  }
}

</mosaic_0001>

<bundles_post_ra>
// kernel: dynamics_model_forward.1
= control target key start
LH: loop header
LB: loop body
LE: loop exit
PB: predicated region body
PF: predicated region fallthrough
CT: control target
= control target key end

     0   :  { %v2004_v3 = vmov 0.0|0.0   ;;  %vm2005_vm0 = vmmov 0   ;;  %v2006_v6 = vmov 0.0   ;;  %s2846_s0 = inlined_call_operand.vmem [shape: f32[98,36], index: 0, kind: input, shape index: {}]   ;;  %s2847_s1 = inlined_call_operand.vmem [shape: f32[2,4], index: 1, kind: input, shape index: {}]   ;;  %s2848_s2 = inlined_call_operand.vmem [shape: f32[36,8], index: 2, kind: input, shape index: {}]   ;;  %s2849_s3 = inlined_call_operand.vmem [shape: f32[1,8], index: 3, kind: input, shape index: {}]   ;;  %s2850_s4 = inlined_call_operand.vmem [shape: f32[8,98,32], index: 4, kind: input, shape index: {}]   ;;  %s2851_s5 = inlined_call_operand.vmem [shape: f32[1,32], index: 5, kind: input, shape index: {}]   ;;  %s2852_s6 = inlined_call_operand.vmem [shape: f32[32,32], index: 6, kind: input, shape index: {}]   ;;  %s2853_s7 = inlined_call_operand.vmem [shape: f32[4,32], index: 7, kind: input, shape index: {}]   ;;  %s2854_s8 = inlined_call_operand.vmem [shape: f32[1,32], index: 8, kind: input, shape index: {}]   ;;  %s2855_s9 = inlined_call_operand.vmem [shape: f32[32,32], index: 9, kind: input, shape index: {}]   ;;  %s2856_s10 = inlined_call_operand.vmem [shape: f32[1,32], index: 10, kind: input, shape index: {}]   ;;  %s2857_s11 = inlined_call_operand.vmem [shape: f32[32,32], index: 11, kind: input, shape index: {}]   ;;  %s2858_s12 = inlined_call_operand.vmem [shape: f32[32,32], index: 12, kind: input, shape index: {}]   ;;  %s2859_s13 = inlined_call_operand.vmem [shape: f32[1,32], index: 13, kind: input, shape index: {}]   ;;  %s2860_s14 = inlined_call_operand.hbm [shape: f32[2,32], index: 14, kind: output, shape index: {}]  }
   0x1   :  { %v61_v0 = vld [vmem:[%s2848_s2] sm:$0xff]  ;;  %v62_v1 = vld [vmem:[%s2848_s2 + $0x8] sm:$0xff]  ;;  %v63_v2 = vld [vmem:[%s2848_s2 + $0x10] sm:$0xff]  ;;  %1816 = vmatprep.subr.bf16.mxu0 %v2004_v3  ;;  %1822 = vmatprep.subr.bf16.mxu1 %v2004_v3 }
   0x2   :  { %v1817_v4 = vpack.c.bf16 %v62_v1, %v61_v0  ;;  %v64_v5 = vld [vmem:[%s2848_s2 + $0x18] sm:$0xff]  ;;  %1699 = vmatprep.mubr.msk.f32.mxu0 %vm2005_vm0, %v2006_v6  ;;  %1764 = vmatprep.mubr.msk.f32.mxu1 %vm2005_vm0, %v2006_v6 }
   0x3   :  { %v1820_v7 = vpack.c.bf16 %v64_v5, %v63_v2 }
   0x4   :  { %1818 = vmatpush3.bf16.msra.mxu0 %v1817_v4 }
   0x5   :  { %1819 = vmatprep.subr.bf16.mxu0 %v2004_v3 }
   0x6   :  { %19 = vsyncpa [#allocation3], 0  ;;  %v65_v8 = vld [vmem:[%s2848_s2 + $0x20] sm:$0xf]  ;;  %vm113_vm1 = vcmask 1043456   ;;  %vm73_vm2 = vcmask 293888  }
   0x7   :  { %v48_v9 = vld [vmem:[%s2846_s0] sm:$0xff]  ;;  %v49_v10 = vld [vmem:[%s2846_s0 + $0x8] sm:$0xff]  ;;  %v50_v11 = vld [vmem:[%s2846_s0 + $0x10] sm:$0xff]  ;;  %v2007_v18 = vmov 1   ;;  %v2008_v19 = vmov 0   ;;  %v2009_v32 = vmov 4  }
   0x8   :  { %1821 = vmatpush3.bf16.msra.mxu0 %v1820_v7  ;;  %v51_v12 = vld [vmem:[%s2846_s0 + $0x18] sm:$0xff]  ;;  %v52_v13 = vld [vmem:[%s2846_s0 + $0x20] sm:$0xff]  ;;  %v53_v14 = vld [vmem:[%s2846_s0 + $0x28] sm:$0xff]  ;;  %1880 = vset.pattern.permute.xlu1 %v2007_v18  ;;  %v2010_v33 = vmov 2   ;;  %v2011_v38 = vmov 7   ;;  %v2012_v39 = vmov 3  }
   0x9   :  { %1697 = vmatprep.subr.mxu0 %v2006_v6  ;;  %v54_v15 = vld [vmem:[%s2846_s0 + $0x30] sm:$0xff]  ;;  %v55_v16 = vld [vmem:[%s2846_s0 + $0x38] sm:$0xff]  ;;  %v56_v17 = vld [vmem:[%s2846_s0 + $0x40] sm:$0xff]  ;;  %1879 = vset.pattern.permute.xlu0 %v2008_v19  ;;  %v2013_v43 = vmov 5   ;;  %v2014_v46 = vmov 6   ;;  %vm1017_vm6 = vcmask 1041408  }
   0xa   :  { %v57_v20 = vld [vmem:[%s2846_s0 + $0x48] sm:$0xff]  ;;  %v58_v21 = vld [vmem:[%s2846_s0 + $0x50] sm:$0xff]  ;;  %v59_v22 = vld [vmem:[%s2846_s0 + $0x58] sm:$0xff]  ;;  %vm1013_vm7 = vcmask 801792   ;;  %vm1097_vm8 = vcmask 31744   ;;  %vm1174_vm9 = vcmask 261120  }
   0xb   :  { %v60_v23 = vld [vmem:[%s2846_s0 + $0x60] sm:$0x3]  ;;  %s2015_s2 = smov [#allocation2]   ;;  %vm1501_vm10 = vcmask 254976  }
   0xc   :  { %1698 = vmatpush3.msk.msra.mxu0 %vm113_vm1, %v65_v8  ;;  %v2199_v24 = vld [vmem:[%s2849_s3] ss:$0 sm:$0xff]  ;;  %s1509_s27 = sshll.u32 %s2015_s2, 4  ;;  %s1510_s27 = int_to_ptr.vmem [resolvable:$true] %s1509_s27 }
   0xd   :  { %1700 = vmatmul.mubr.msk.f32.vlgmr.msra.gmra.mrb[0].mxu0 %vm73_vm2, %v48_v9  ;;  %1858 = vmatprep.subr.bf16.mxu0 %v2004_v3  ;;  %p1985_p1 = scmp.lt.s32.totalorder %s1510_s27, %s1510_s27 }
   0xe   :  { %1702 = vmatprep.mubr.msk.f32.mxu0 %vm2005_vm0, %v2006_v6 }
  0x11   :  { %1703 = vmatmul.mubr.msk.f32.gmra.mrb[2].mxu0 %vm73_vm2, %v49_v10 }
  0x12   :  { %1705 = vmatprep.mubr.msk.f32.mxu0 %vm2005_vm0, %v2006_v6 }
  0x15   :  { %1706 = vmatmul.mubr.msk.f32.gmra.mrb[4].mxu0 %vm73_vm2, %v50_v11 }
  0x16   :  { %1708 = vmatprep.mubr.msk.f32.mxu0 %vm2005_vm0, %v2006_v6 }
  0x19   :  { %1709 = vmatmul.mubr.msk.f32.gmra.mrb[6].mxu0 %vm73_vm2, %v51_v12 }
  0x1a   :  { %1711 = vmatprep.mubr.msk.f32.mxu0 %vm2005_vm0, %v2006_v6 }
  0x1d   :  { %1712 = vmatmul.mubr.msk.f32.gmra.mrb[8].mxu0 %vm73_vm2, %v52_v13 }
  0x1e   :  { %1714 = vmatprep.mubr.msk.f32.mxu0 %vm2005_vm0, %v2006_v6 }
  0x21   :  { %1715 = vmatmul.mubr.msk.f32.gmra.mrb[10].mxu0 %vm73_vm2, %v53_v14 }
  0x22   :  { %1717 = vmatprep.mubr.msk.f32.mxu0 %vm2005_vm0, %v2006_v6 }
  0x25   :  { %1718 = vmatmul.mubr.msk.f32.gmra.mrb[12].mxu0 %vm73_vm2, %v54_v15 }
  0x26   :  { %1720 = vmatprep.mubr.msk.f32.mxu0 %vm2005_vm0, %v2006_v6 }
  0x29   :  { %1721 = vmatmul.mubr.msk.f32.gmra.mrb[14].mxu0 %vm73_vm2, %v55_v16 }
  0x2a   :  { %1723 = vmatprep.mubr.msk.f32.mxu0 %vm2005_vm0, %v2006_v6 }
  0x2d   :  { %1724 = vmatmul.mubr.msk.f32.gmra.mrb[16].mxu0 %vm73_vm2, %v56_v17 }
  0x2e   :  { %1726 = vmatprep.mubr.msk.f32.mxu0 %vm2005_vm0, %v2006_v6 }
  0x31   :  { %1727 = vmatmul.mubr.msk.f32.gmra.mrb[18].mxu0 %vm73_vm2, %v57_v20 }
  0x32   :  { %1729 = vmatprep.mubr.msk.f32.mxu0 %vm2005_vm0, %v2006_v6 }
  0x35   :  { %1730 = vmatmul.mubr.msk.f32.gmra.mrb[20].mxu0 %vm73_vm2, %v58_v21 }
  0x36   :  { %1732 = vmatprep.mubr.msk.f32.mxu0 %vm2005_vm0, %v2006_v6 }
  0x39   :  { %1733 = vmatmul.mubr.msk.f32.gmra.mrb[22].mxu0 %vm73_vm2, %v59_v22 }
  0x3a   :  { %1735 = vmatprep.mubr.msk.f32.mxu0 %vm2005_vm0, %v2006_v6 }
  0x3d   :  { %1736 = vmatmul.mubr.msk.f32.gmra.mrb[24].mxu0 %vm73_vm2, %v60_v23 }
  0x3e   :  { %1813 = vmatprep.mubr.msk.f32.mxu0 %vm2005_vm0, %v2006_v6 }
  0xe0   :  { %v183_v25 = vpop.f32.mrb[0].mxu0 }
  0xe1   :  { %v184_v26 = vadd.f32 %v2199_v24, %v183_v25  ;;  %v1701_v27 = vpop.f32.mrb[1].mxu0 }
  0xe3   :  { %v247_v28 = vmax.f32 %v184_v26, 0.0 }
  0xe4   :  { %v188_v29 = vpop.f32.mrb[2].mxu0 }
  0xe5   :  { %366 = vperm.xlu1 %1880, %v247_v28   ;;  %275 = vperm.xlu0 %1879, %v247_v28   ;;  %v1704_v30 = vpop.f32.mrb[3].mxu0  ;;  %v189_v35 = vadd.f32 %v2199_v24, %v188_v29 }
  0xe6   :  { %v1532_v30 = vld [vmem:[%s2850_s4 + $0x68] sm:$0xff] }
  0xe7   :  { %v248_v40 = vmax.f32 %v189_v35, 0.0  ;;  %v1545_v35 = vld [vmem:[%s2850_s4 + $0xd0] sm:$0xff] }
  0xe8   :  { %v193_v31 = vpop.f32.mrb[4].mxu0 }
  0xe9   :  { %1883 = vset.pattern.permute.xlu1 %v2009_v32  ;;  %1881 = vset.pattern.permute.xlu0 %v2010_v33  ;;  %v1707_v34 = vpop.f32.mrb[5].mxu0  ;;  %v194_v54 = vadd.f32 %v2199_v24, %v193_v31  ;;  %v260_v31 = vld [vmem:[%s2850_s4] sm:$0xff] }
  0xea   :  { %642 = vperm.xlu1 %1883, %v247_v28   ;;  %458 = vperm.xlu0 %1881, %v247_v28   ;;  %v261_v34 = vld [vmem:[%s2850_s4 + $0x8] sm:$0xff] }
  0xeb   :  { %v249_v56 = vmax.f32 %v194_v54, 0.0 }
  0xec   :  { %v198_v36 = vpop.f32.mrb[6].mxu0 }
  0xed   :  { %v1710_v37 = vpop.f32.mrb[7].mxu0  ;;  %v199_v49 = vadd.f32 %v2199_v24, %v198_v36  ;;  %v1533_v36 = vld [vmem:[%s2850_s4 + $0x70] sm:$0xff] }
  0xee   :  { %1886 = vset.pattern.permute.xlu1 %v2011_v38  ;;  %1882 = vset.pattern.permute.xlu0 %v2012_v39 }
  0xef   :  { %918 = vperm.xlu1 %1886, %v247_v28   ;;  %550 = vperm.xlu0 %1882, %v247_v28   ;;  %v2216_v50 = vmax.f32 %v199_v49, 0.0 }
  0xf0   :  { %v203_v41 = vpop.f32.mrb[8].mxu0 }
  0xf1   :  { %v1713_v42 = vpop.f32.mrb[9].mxu0  ;;  %v204_v53 = vadd.f32 %v2199_v24, %v203_v41 }
  0xf3   :  { %1888 = vset.pattern.permute.xlu1 %v2007_v18  ;;  %1884 = vset.pattern.permute.xlu0 %v2013_v43  ;;  %v2233_v55 = vmax.f32 %v204_v53, 0.0 }
  0xf4   :  { %734 = vperm.xlu0 %1884, %v247_v28   ;;  %370 = vperm.xlu1 %1888, %v248_v40   ;;  %v208_v44 = vpop.f32.mrb[10].mxu0 }
  0xf5   :  { %v1716_v45 = vpop.f32.mrb[11].mxu0  ;;  %v209_v57 = vadd.f32 %v2199_v24, %v208_v44 }
  0xf7   :  { %v2248_v58 = vmax.f32 %v209_v57, 0.0 }
  0xf8   :  { %1885 = vset.pattern.permute.xlu0 %v2014_v46  ;;  %1889 = vset.pattern.permute.xlu1 %v2010_v33  ;;  %v2211_v47 = vpop.f32.mrb[12].mxu0 }
  0xf9   :  { %826 = vperm.xlu0 %1885, %v247_v28   ;;  %462 = vperm.xlu1 %1889, %v248_v40   ;;  %v1719_v48 = vpop.f32.mrb[13].mxu0  ;;  %v214_v61 = vadd.f32 %v2199_v24, %v2211_v47  ;;  %v1558_v47 = vld [vmem:[%s2850_s4 + $0x138] sm:$0xff] }
  0xfb   :  { %v2264_v62 = vmax.f32 %v214_v61, 0.0 }
  0xfc   :  { %v2223_v51 = vpop.f32.mrb[14].mxu0 }
  0xfd   :  { %1887 = vset.pattern.permute.xlu0 %v2008_v19  ;;  %1890 = vset.pattern.permute.xlu1 %v2012_v39  ;;  %v1722_v52 = vpop.f32.mrb[15].mxu0  ;;  %v219_v1 = vadd.f32 %v2199_v24, %v2223_v51 }
  0xfe   :  { %554 = vperm.xlu1 %1890, %v248_v40   ;;  %280 = vperm.xlu0 %1887, %v248_v40   ;;  %v1546_v52 = vld [vmem:[%s2850_s4 + $0xd8] sm:$0xff] }
  0xff   :  { %v2284_v2 = vmax.f32 %v219_v1, 0.0  ;;  %v1572_v1 = vld [vmem:[%s2850_s4 + $0x1a8] sm:$0xff] }
 0x100   :  { %v223_v59 = vpop.f32.mrb[16].mxu0 }
 0x101   :  { %v1725_v60 = vpop.f32.mrb[17].mxu0  ;;  %v224_v4 = vadd.f32 %v2199_v24, %v223_v59 }
 0x102   :  { %1891 = vset.pattern.permute.xlu1 %v2009_v32  ;;  %290 = vperm.xlu0 %1887, %v2216_v50   ;;  %v1559_v60 = vld [vmem:[%s2850_s4 + $0x140] sm:$0xff] }
 0x103   :  { %646 = vperm.xlu1 %1891, %v248_v40   ;;  %v2290_v5 = vmax.f32 %v224_v4, 0.0 }
 0x104   :  { %v228_v63 = vpop.f32.mrb[18].mxu0 }
 0x105   :  { %v1728_v0 = vpop.f32.mrb[19].mxu0  ;;  %v229_v7 = vadd.f32 %v2199_v24, %v228_v63 }
 0x106   :  { %1904 = vset.pattern.permute.xlu0 %v2010_v33  ;;  %v1584_v0 = vld [vmem:[%s2850_s4 + $0x208] sm:$0xff] }
 0x107   :  { %1892 = vset.pattern.permute.xlu1 %v2013_v43  ;;  %470 = vperm.xlu0 %1904, %v2216_v50   ;;  %v2300_v8 = vmax.f32 %v229_v7, 0.0 }
 0x108   :  { %738 = vperm.xlu1 %1892, %v248_v40   ;;  %v233_v9 = vpop.f32.mrb[20].mxu0 }
 0x109   :  { %v1731_v10 = vpop.f32.mrb[21].mxu0  ;;  %v234_v13 = vadd.f32 %v2199_v24, %v233_v9 }
 0x10a   :  { %v1597_v10 = vld [vmem:[%s2850_s4 + $0x270] sm:$0xff] }
 0x10b   :  { %1907 = vset.pattern.permute.xlu0 %v2013_v43  ;;  %v2317_v16 = vmax.f32 %v234_v13, 0.0 }
 0x10c   :  { %1893 = vset.pattern.permute.xlu1 %v2014_v46  ;;  %746 = vperm.xlu0 %1907, %v2216_v50   ;;  %v238_v21 = vpop.f32.mrb[22].mxu0 }
 0x10d   :  { %830 = vperm.xlu1 %1893, %v248_v40   ;;  %v1734_v22 = vpop.f32.mrb[23].mxu0  ;;  %v239_v23 = vadd.f32 %v2199_v24, %v238_v21 }
 0x10f   :  { %v2330_v27 = vmax.f32 %v239_v23, 0.0 }
 0x110   :  { %1909 = vset.pattern.permute.xlu0 %v2011_v38  ;;  %v243_v45 = vpop.f32.mrb[24].mxu0 }
 0x111   :  { %1894 = vset.pattern.permute.xlu1 %v2011_v38  ;;  %930 = vperm.xlu0 %1909, %v2216_v50   ;;  %v1737_v48 = vpop.f32.mrb[25].mxu0  ;;  %v244_v51 = vadd.f32 %v2199_v24, %v243_v45  ;;  %v1571_v24 = vld [vmem:[%s2850_s4 + $0x1a0] sm:$0xff] }
 0x112   :  { %922 = vperm.xlu1 %1894, %v248_v40  }
 0x113   :  { %v2366_v59 = vmax.f32 %v244_v51, 0.0 }
 0x115   :  { %1910 = vset.pattern.permute.xlu0 %v2008_v19 }
 0x116   :  { %1895 = vset.pattern.permute.xlu1 %v2008_v19  ;;  %295 = vperm.xlu0 %1910, %v2233_v55  }
 0x117   :  { %285 = vperm.xlu1 %1895, %v249_v56  }
 0x11a   :  { %1913 = vset.pattern.permute.xlu0 %v2012_v39 }
 0x11b   :  { %1896 = vset.pattern.permute.xlu1 %v2007_v18  ;;  %566 = vperm.xlu0 %1913, %v2233_v55  }
 0x11c   :  { %374 = vperm.xlu1 %1896, %v249_v56  }
 0x11f   :  { %1915 = vset.pattern.permute.xlu0 %v2013_v43 }
 0x120   :  { %1897 = vset.pattern.permute.xlu1 %v2010_v33  ;;  %750 = vperm.xlu0 %1915, %v2233_v55  }
 0x121   :  { %466 = vperm.xlu1 %1897, %v249_v56  }
 0x124   :  { %1917 = vset.pattern.permute.xlu0 %v2011_v38 }
 0x125   :  { %1898 = vset.pattern.permute.xlu1 %v2012_v39  ;;  %934 = vperm.xlu0 %1917, %v2233_v55  }
 0x126   :  { %558 = vperm.xlu1 %1898, %v249_v56  }
 0x129   :  { %1919 = vset.pattern.permute.xlu0 %v2007_v18 }
 0x12a   :  { %1899 = vset.pattern.permute.xlu1 %v2009_v32  ;;  %386 = vperm.xlu0 %1919, %v2248_v58  }
 0x12b   :  { %650 = vperm.xlu1 %1899, %v249_v56  }
 0x12e   :  { %1920 = vset.pattern.permute.xlu0 %v2010_v33 }
 0x12f   :  { %1900 = vset.pattern.permute.xlu1 %v2013_v43  ;;  %478 = vperm.xlu0 %1920, %v2248_v58  }
 0x130   :  { %742 = vperm.xlu1 %1900, %v249_v56  }
 0x133   :  { %1922 = vset.pattern.permute.xlu0 %v2009_v32 }
 0x134   :  { %1901 = vset.pattern.permute.xlu1 %v2014_v46  ;;  %662 = vperm.xlu0 %1922, %v2248_v58  }
 0x135   :  { %834 = vperm.xlu1 %1901, %v249_v56  }
 0x138   :  { %1924 = vset.pattern.permute.xlu0 %v2014_v46 }
 0x139   :  { %1902 = vset.pattern.permute.xlu1 %v2011_v38  ;;  %846 = vperm.xlu0 %1924, %v2248_v58  }
 0x13a   :  { %926 = vperm.xlu1 %1902, %v249_v56  }
 0x13d   :  { %1928 = vset.pattern.permute.xlu0 %v2010_v33 }
 0x13e   :  { %1903 = vset.pattern.permute.xlu1 %v2007_v18  ;;  %482 = vperm.xlu0 %1928, %v2264_v62  }
 0x13f   :  { %378 = vperm.xlu1 %1903, %v2216_v50  }
 0x142   :  { %1930 = vset.pattern.permute.xlu0 %v2009_v32 }
 0x143   :  { %1905 = vset.pattern.permute.xlu1 %v2012_v39  ;;  %666 = vperm.xlu0 %1930, %v2264_v62  }
 0x144   :  { %562 = vperm.xlu1 %1905, %v2216_v50  }
 0x147   :  { %1932 = vset.pattern.permute.xlu0 %v2014_v46 }
 0x148   :  { %1906 = vset.pattern.permute.xlu1 %v2009_v32  ;;  %850 = vperm.xlu0 %1932, %v2264_v62  }
 0x149   :  { %654 = vperm.xlu1 %1906, %v2216_v50  }
 0x14c   :  { %1933 = vset.pattern.permute.xlu0 %v2011_v38 }
 0x14d   :  { %1908 = vset.pattern.permute.xlu1 %v2014_v46  ;;  %942 = vperm.xlu0 %1933, %v2264_v62  }
 0x14e   :  { %838 = vperm.xlu1 %1908, %v2216_v50  }
 0x151   :  { %1934 = vset.pattern.permute.xlu0 %v2008_v19 }
 0x152   :  { %1911 = vset.pattern.permute.xlu1 %v2007_v18  ;;  %310 = vperm.xlu0 %1934, %v2284_v2  }
 0x153   :  { %382 = vperm.xlu1 %1911, %v2233_v55  }
 0x156   :  { %315 = vperm.xlu0 %1934, %v2290_v5  }
 0x157   :  { %1912 = vset.pattern.permute.xlu1 %v2010_v33 }
 0x158   :  { %474 = vperm.xlu1 %1912, %v2233_v55  }
 0x15a   :  { %1947 = vset.pattern.permute.xlu0 %v2014_v46 }
 0x15b   :  { %858 = vperm.xlu0 %1947, %v2290_v5  }
 0x15c   :  { %1914 = vset.pattern.permute.xlu1 %v2009_v32 }
 0x15d   :  { %658 = vperm.xlu1 %1914, %v2233_v55  }
 0x15f   :  { %1950 = vset.pattern.permute.xlu0 %v2007_v18 }
 0x160   :  { %402 = vperm.xlu0 %1950, %v2300_v8  }
 0x161   :  { %1916 = vset.pattern.permute.xlu1 %v2014_v46 }
 0x162   :  { %842 = vperm.xlu1 %1916, %v2233_v55  }
 0x164   :  { %v367_v11 = vpop.permute.xlu1 %366  ;;  %v276_v12 = vpop.permute.xlu0 %275  ;;  %1952 = vset.pattern.permute.xlu0 %v2012_v39 }
 0x165   :  { %586 = vperm.xlu0 %1952, %v2300_v8   ;;  %v417_v41 = vmul.f32 %v1532_v30, %v367_v11  ;;  %v338_v42 = vmul.f32 %v276_v12, %v260_v31  ;;  %v1585_v11 = vld [vmem:[%s2850_s4 + $0x210] sm:$0xff] }
 0x166   :  { %1918 = vset.pattern.permute.xlu1 %v2008_v19 }
 0x167   :  { %300 = vperm.xlu1 %1918, %v2248_v58   ;;  %v430_v53 = vadd.f32 %v417_v41, %v338_v42 }
 0x169   :  { %v2312_v14 = vpop.permute.xlu1 %642  ;;  %v459_v15 = vpop.permute.xlu0 %458  ;;  %1956 = vset.pattern.permute.xlu0 %v2011_v38 }
 0x16a   :  { %954 = vperm.xlu0 %1956, %v2300_v8   ;;  %v509_v49 = vmul.f32 %v1545_v35, %v459_v15  ;;  %v693_v7 = vmul.f32 %v1571_v24, %v2312_v14  ;;  %v1598_v14 = vld [vmem:[%s2850_s4 + $0x278] sm:$0xff] }
 0x16b   :  { %1921 = vset.pattern.permute.xlu1 %v2012_v39 }
 0x16c   :  { %570 = vperm.xlu1 %1921, %v2248_v58   ;;  %v522_v57 = vadd.f32 %v509_v49, %v430_v53 }
 0x16e   :  { %v2320_v17 = vpop.permute.xlu1 %918  ;;  %v551_v20 = vpop.permute.xlu0 %550  ;;  %1958 = vset.pattern.permute.xlu0 %v2007_v18 }
 0x16f   :  { %406 = vperm.xlu0 %1958, %v2317_v16   ;;  %v601_v54 = vmul.f32 %v1558_v47, %v551_v20 }
 0x170   :  { %1923 = vset.pattern.permute.xlu1 %v2013_v43 }
 0x171   :  { %754 = vperm.xlu1 %1923, %v2248_v58   ;;  %v614_v61 = vadd.f32 %v601_v54, %v522_v57  ;;  %v263_v54 = vld [vmem:[%s2850_s4 + $0x18] sm:$0xff] }
 0x173   :  { %v735_v25 = vpop.permute.xlu0 %734  ;;  %v371_v26 = vpop.permute.xlu1 %370  ;;  %1962 = vset.pattern.permute.xlu0 %v2013_v43  ;;  %v706_v12 = vadd.f32 %v693_v7, %v614_v61  ;;  %v262_v61 = vld [vmem:[%s2850_s4 + $0x10] sm:$0xff]  ;;  %v1560_v7 = vld [vmem:[%s2850_s4 + $0x148] sm:$0xff] }
 0x174   :  { %774 = vperm.xlu0 %1962, %v2317_v16   ;;  %v418_v50 = vmul.f32 %v1533_v36, %v371_v26  ;;  %v785_v13 = vmul.f32 %v1584_v0, %v735_v25  ;;  %v1611_v25 = vld [vmem:[%s2850_s4 + $0x2e0] sm:$0xff] }
 0x175   :  { %1925 = vset.pattern.permute.xlu1 %v2011_v38 }
 0x176   :  { %938 = vperm.xlu1 %1925, %v2248_v58   ;;  %v798_v26 = vadd.f32 %v785_v13, %v706_v12 }
 0x178   :  { %v827_v28 = vpop.permute.xlu0 %826  ;;  %v463_v29 = vpop.permute.xlu1 %462  ;;  %1967 = vset.pattern.permute.xlu0 %v2010_v33 }
 0x179   :  { %502 = vperm.xlu0 %1967, %v2330_v27   ;;  %v510_v58 = vmul.f32 %v1546_v52, %v463_v29  ;;  %v877_v21 = vmul.f32 %v1597_v10, %v827_v28 }
 0x17a   :  { %1926 = vset.pattern.permute.xlu1 %v2008_v19 }
 0x17b   :  { %305 = vperm.xlu1 %1926, %v2264_v62   ;;  %v890_v28 = vadd.f32 %v877_v21, %v798_v26  ;;  %v1586_v26 = vld [vmem:[%s2850_s4 + $0x218] sm:$0xff] }
 0x17d   :  { %v555_v37 = vpop.permute.xlu1 %554  ;;  %v281_v40 = vpop.permute.xlu0 %280  ;;  %1968 = vset.pattern.permute.xlu0 %v2012_v39 }
 0x17e   :  { %v339_v44 = vmul.f32 %v281_v40, %v261_v34  ;;  %594 = vperm.xlu0 %1968, %v2330_v27   ;;  %v602_v9 = vmul.f32 %v1559_v60, %v555_v37  ;;  %v1548_v60 = vld [vmem:[%s2850_s4 + $0xe8] sm:$0xff] }
 0x17f   :  { %1927 = vset.pattern.permute.xlu1 %v2007_v18 }
 0x180   :  { %390 = vperm.xlu1 %1927, %v2264_v62   ;;  %v431_v55 = vadd.f32 %v418_v50, %v339_v44 }
 0x181   :  { %v291_v50 = vpop.permute.xlu0 %290 }
 0x182   :  { %v647_v56 = vpop.permute.xlu1 %646  ;;  %1971 = vset.pattern.permute.xlu0 %v2014_v46  ;;  %v523_v63 = vadd.f32 %v510_v58, %v431_v55  ;;  %v341_v55 = vmul.f32 %v291_v50, %v263_v54  ;;  %v1534_v58 = vld [vmem:[%s2850_s4 + $0x78] sm:$0xff] }
 0x183   :  { %870 = vperm.xlu0 %1971, %v2330_v27   ;;  %v694_v20 = vmul.f32 %v1572_v1, %v647_v56 }
 0x184   :  { %1929 = vset.pattern.permute.xlu1 %v2012_v39  ;;  %v615_v15 = vadd.f32 %v602_v9, %v523_v63  ;;  %v1547_v63 = vld [vmem:[%s2850_s4 + $0xe0] sm:$0xff] }
 0x185   :  { %574 = vperm.xlu1 %1929, %v2264_v62  }
 0x186   :  { %v707_v29 = vadd.f32 %v694_v20, %v615_v15  ;;  %v471_v52 = vpop.permute.xlu0 %470  ;;  %v1573_v15 = vld [vmem:[%s2850_s4 + $0x1b0] sm:$0xff] }
 0x187   :  { %v739_v4 = vpop.permute.xlu1 %738  ;;  %1973 = vset.pattern.permute.xlu0 %v2007_v18  ;;  %v512_v9 = vmul.f32 %v1548_v60, %v471_v52 }
 0x188   :  { %414 = vperm.xlu0 %1973, %v2366_v59   ;;  %v786_v22 = vmul.f32 %v1585_v11, %v739_v4  ;;  %v1561_v4 = vld [vmem:[%s2850_s4 + $0x150] sm:$0xff] }
 0x189   :  { %1931 = vset.pattern.permute.xlu1 %v2013_v43 }
 0x18a   :  { %758 = vperm.xlu1 %1931, %v2264_v62   ;;  %v1610_v62 = vld [vmem:[%s2850_s4 + $0x2d8] sm:$0xff]  ;;  %v799_v31 = vadd.f32 %v786_v22, %v707_v29 }
 0x18b   :  { %v969_v35 = vmul.f32 %v1610_v62, %v2320_v17  ;;  %v747_v56 = vpop.permute.xlu0 %746  ;;  %v1587_v62 = vld [vmem:[%s2850_s4 + $0x220] sm:$0xff] }
 0x18c   :  { %v831_v23 = vpop.permute.xlu1 %830  ;;  %1974 = vset.pattern.permute.xlu0 %v2011_v38 }
 0x18d   :  { %962 = vperm.xlu0 %1974, %v2330_v27   ;;  %v878_v30 = vmul.f32 %v1598_v14, %v831_v23  ;;  %v982_v40 = vadd.f32 %v969_v35, %v890_v28  ;;  %v1574_v23 = vld [vmem:[%s2850_s4 + $0x1b8] sm:$0xff] }
 0x18e   :  { %1935 = vset.pattern.permute.xlu1 %v2007_v18 }
 0x18f   :  { %394 = vperm.xlu1 %1935, %v2284_v2   ;;  %v891_v36 = vadd.f32 %v878_v30, %v799_v31  ;;  %v1599_v31 = vld [vmem:[%s2850_s4 + $0x280] sm:$0xff] }
 0x190   :  { %v931_v13 = vpop.permute.xlu0 %930 }
 0x191   :  { %v923_v34 = vpop.permute.xlu1 %922  ;;  %966 = vperm.xlu0 %1974, %v2366_v59  }
 0x192   :  { %v970_v37 = vmul.f32 %v1611_v25, %v923_v34 }
 0x193   :  { %1936 = vset.pattern.permute.xlu1 %v2010_v33 }
 0x194   :  { %486 = vperm.xlu1 %1936, %v2284_v2   ;;  %v983_v41 = vadd.f32 %v970_v37, %v891_v36 }
 0x195   :  { %v296_v25 = vpop.permute.xlu0 %295 }
 0x196   :  { %v286_v42 = vpop.permute.xlu1 %285  ;;  %v1823_v44 = vpack.c.bf16 %v983_v41, %v982_v40  ;;  %v1612_v40 = vld [vmem:[%s2850_s4 + $0x2e8] sm:$0xff]  ;;  %v788_v41 = vmul.f32 %v1587_v62, %v747_v56 }
 0x197   :  { %v340_v11 = vmul.f32 %v286_v42, %v262_v61 }
 0x198   :  { %1824 = vmatpush3.bf16.msra.mxu1 %v1823_v44  ;;  %1937 = vset.pattern.permute.xlu1 %v2012_v39  ;;  %v1600_v44 = vld [vmem:[%s2850_s4 + $0x288] sm:$0xff] }
 0x199   :  { %578 = vperm.xlu1 %1937, %v2284_v2   ;;  %1825 = vmatprep.subr.bf16.mxu1 %v2004_v3 }
 0x19a   :  { %v567_v54 = vpop.permute.xlu0 %566 }
 0x19b   :  { %v375_v45 = vpop.permute.xlu1 %374 }
 0x19c   :  { %v419_v1 = vmul.f32 %v1534_v58, %v375_v45 }
 0x19d   :  { %1938 = vset.pattern.permute.xlu1 %v2009_v32 }
 0x19e   :  { %670 = vperm.xlu1 %1938, %v2284_v2   ;;  %v432_v21 = vadd.f32 %v419_v1, %v340_v11 }
 0x1a0   :  { %v467_v17 = vpop.permute.xlu1 %466 }
 0x1a1   :  { %v511_v12 = vmul.f32 %v1547_v63, %v467_v17  ;;  %v264_v63 = vld [vmem:[%s2850_s4 + $0x20] sm:$0xff] }
 0x1a2   :  { %1939 = vset.pattern.permute.xlu1 %v2013_v43 }
 0x1a3   :  { %762 = vperm.xlu1 %1939, %v2284_v2   ;;  %v524_v29 = vadd.f32 %v511_v12, %v432_v21 }
 0x1a5   :  { %v559_v47 = vpop.permute.xlu1 %558 }
 0x1a6   :  { %v603_v22 = vmul.f32 %v1560_v7, %v559_v47  ;;  %v1613_v47 = vld [vmem:[%s2850_s4 + $0x2f0] sm:$0xff]  ;;  %v342_v7 = vmul.f32 %v296_v25, %v264_v63 }
 0x1a7   :  { %1940 = vset.pattern.permute.xlu1 %v2014_v46 }
 0x1a8   :  { %854 = vperm.xlu1 %1940, %v2284_v2   ;;  %v616_v36 = vadd.f32 %v603_v22, %v524_v29  ;;  %v265_v22 = vld [vmem:[%s2850_s4 + $0x28] sm:$0xff] }
 0x1aa   :  { %v651_v48 = vpop.permute.xlu1 %650 }
 0x1ab   :  { %v695_v30 = vmul.f32 %v1573_v15, %v651_v48  ;;  %v1537_v15 = vld [vmem:[%s2850_s4 + $0x90] sm:$0xff] }
 0x1ac   :  { %1941 = vset.pattern.permute.xlu1 %v2011_v38 }
 0x1ad   :  { %946 = vperm.xlu1 %1941, %v2284_v2   ;;  %v1535_v2 = vld [vmem:[%s2850_s4 + $0x80] sm:$0xff]  ;;  %v708_v45 = vadd.f32 %v695_v30, %v616_v36  ;;  %v1550_v30 = vld [vmem:[%s2850_s4 + $0xf8] sm:$0xff] }
 0x1af   :  { %v743_v49 = vpop.permute.xlu1 %742 }
 0x1b0   :  { %v787_v37 = vmul.f32 %v1586_v26, %v743_v49  ;;  %v1575_v26 = vld [vmem:[%s2850_s4 + $0x1c0] sm:$0xff] }
 0x1b1   :  { %1942 = vset.pattern.permute.xlu1 %v2007_v18 }
 0x1b2   :  { %398 = vperm.xlu1 %1942, %v2290_v5   ;;  %v800_v50 = vadd.f32 %v787_v37, %v708_v45  ;;  %v1588_v37 = vld [vmem:[%s2850_s4 + $0x228] sm:$0xff] }
 0x1b4   :  { %v835_v51 = vpop.permute.xlu1 %834 }
 0x1b5   :  { %v879_v17 = vmul.f32 %v1599_v31, %v835_v51 }
 0x1b6   :  { %1943 = vset.pattern.permute.xlu1 %v2010_v33 }
 0x1b7   :  { %490 = vperm.xlu1 %1943, %v2290_v5  }
 0x1b9   :  { %v927_v53 = vpop.permute.xlu1 %926 }
 0x1ba   :  { %v971_v52 = vmul.f32 %v1612_v40, %v927_v53  ;;  %v1576_v40 = vld [vmem:[%s2850_s4 + $0x1c8] sm:$0xff] }
 0x1bb   :  { %1944 = vset.pattern.permute.xlu1 %v2012_v39 }
 0x1bc   :  { %582 = vperm.xlu1 %1944, %v2290_v5  }
 0x1be   :  { %v379_v57 = vpop.permute.xlu1 %378 }
 0x1bf   :  { %v420_v24 = vmul.f32 %v1535_v2, %v379_v57 }
 0x1c0   :  { %1945 = vset.pattern.permute.xlu1 %v2009_v32 }
 0x1c1   :  { %v433_v0 = vadd.f32 %v420_v24, %v341_v55  ;;  %674 = vperm.xlu1 %1945, %v2290_v5   ;;  %v892_v55 = vadd.f32 %v879_v17, %v800_v50  ;;  %v751_v24 = vpop.permute.xlu0 %750  ;;  %v1601_v17 = vld [vmem:[%s2850_s4 + $0x290] sm:$0xff] }
 0x1c2   :  { %v1589_v50 = vld [vmem:[%s2850_s4 + $0x230] sm:$0xff] }
 0x1c3   :  { %v563_v10 = vpop.permute.xlu1 %562  ;;  %v525_v20 = vadd.f32 %v512_v9, %v433_v0  ;;  %v984_v57 = vadd.f32 %v971_v52, %v892_v55  ;;  %v1536_v0 = vld [vmem:[%s2850_s4 + $0x88] sm:$0xff] }
 0x1c4   :  { %v604_v14 = vmul.f32 %v1561_v4, %v563_v10  ;;  %v1549_v4 = vld [vmem:[%s2850_s4 + $0xf0] sm:$0xff] }
 0x1c5   :  { %1946 = vset.pattern.permute.xlu1 %v2013_v43  ;;  %v2486_v61 = vpop.permute.xlu0 %934 }
 0x1c6   :  { %766 = vperm.xlu1 %1946, %v2290_v5   ;;  %v617_v34 = vadd.f32 %v604_v14, %v525_v20  ;;  %v1562_v20 = vld [vmem:[%s2850_s4 + $0x158] sm:$0xff] }
 0x1c7   :  { %v605_v29 = vmul.f32 %v1562_v20, %v567_v54 }
 0x1c8   :  { %v655_v28 = vpop.permute.xlu1 %654 }
 0x1c9   :  { %v696_v35 = vmul.f32 %v1574_v23, %v655_v28  ;;  %v387_v10 = vpop.permute.xlu0 %386 }
 0x1ca   :  { %1948 = vset.pattern.permute.xlu1 %v2011_v38  ;;  %v422_v23 = vmul.f32 %v1537_v15, %v387_v10 }
 0x1cb   :  { %v709_v42 = vadd.f32 %v696_v35, %v617_v34  ;;  %950 = vperm.xlu1 %1948, %v2290_v5   ;;  %v972_v5 = vmul.f32 %v1613_v47, %v931_v13  ;;  %v1563_v35 = vld [vmem:[%s2850_s4 + $0x160] sm:$0xff]  ;;  %v789_v47 = vmul.f32 %v1588_v37, %v751_v24  ;;  %v1577_v37 = vld [vmem:[%s2850_s4 + $0x1d0] sm:$0xff] }
 0x1cd   :  { %v839_v48 = vpop.permute.xlu1 %838  ;;  %v801_v49 = vadd.f32 %v788_v41, %v709_v42  ;;  %v479_v21 = vpop.permute.xlu0 %478 }
 0x1ce   :  { %v880_v2 = vmul.f32 %v1600_v44, %v839_v48 }
 0x1cf   :  { %1949 = vset.pattern.permute.xlu1 %v2008_v19 }
 0x1d0   :  { %v893_v56 = vadd.f32 %v880_v2, %v801_v49  ;;  %320 = vperm.xlu1 %1949, %v2300_v8   ;;  %v1602_v2 = vld [vmem:[%s2850_s4 + $0x298] sm:$0xff] }
 0x1d1   :  { %v663_v36 = vpop.permute.xlu0 %662 }
 0x1d2   :  { %v985_v58 = vadd.f32 %v972_v5, %v893_v56  ;;  %v383_v51 = vpop.permute.xlu1 %382  ;;  %v698_v48 = vmul.f32 %v1576_v40, %v663_v36 }
 0x1d3   :  { %v421_v9 = vmul.f32 %v1536_v0, %v383_v51 }
 0x1d4   :  { %1951 = vset.pattern.permute.xlu1 %v2010_v33  ;;  %v1826_v60 = vpack.c.bf16 %v985_v58, %v984_v57  ;;  %v1614_v58 = vld [vmem:[%s2850_s4 + $0x2f8] sm:$0xff] }
 0x1d5   :  { %494 = vperm.xlu1 %1951, %v2300_v8   ;;  %v434_v13 = vadd.f32 %v421_v9, %v342_v7  ;;  %v847_v55 = vpop.permute.xlu0 %846 }
 0x1d6   :  { %1827 = vmatpush3.bf16.msra.mxu1 %v1826_v60  ;;  %v882_v51 = vmul.f32 %v1602_v2, %v847_v55  ;;  %v1615_v60 = vld [vmem:[%s2850_s4 + $0x300] sm:$0xff] }
 0x1d7   :  { %v475_v53 = vpop.permute.xlu1 %474  ;;  %1828 = vmatprep.subr.bf16.mxu1 %v2004_v3  ;;  %v1591_v2 = vld [vmem:[%s2850_s4 + $0x240] sm:$0xff] }
 0x1d8   :  { %v513_v11 = vmul.f32 %v1549_v4, %v475_v53 }
 0x1d9   :  { %1953 = vset.pattern.permute.xlu1 %v2009_v32 }
 0x1da   :  { %678 = vperm.xlu1 %1953, %v2300_v8   ;;  %v526_v14 = vadd.f32 %v513_v11, %v434_v13  ;;  %v483_v13 = vpop.permute.xlu0 %482 }
 0x1dc   :  { %v659_v1 = vpop.permute.xlu1 %658  ;;  %v618_v28 = vadd.f32 %v605_v29, %v526_v14 }
 0x1dd   :  { %v697_v31 = vmul.f32 %v1575_v26, %v659_v1  ;;  %v973_v1 = vmul.f32 %v1614_v58, %v2486_v61  ;;  %v1551_v26 = vld [vmem:[%s2850_s4 + $0x100] sm:$0xff] }
 0x1de   :  { %1954 = vset.pattern.permute.xlu1 %v2013_v43  ;;  %v667_v20 = vpop.permute.xlu0 %666 }
 0x1df   :  { %770 = vperm.xlu1 %1954, %v2300_v8   ;;  %v710_v44 = vadd.f32 %v697_v31, %v618_v28  ;;  %v515_v28 = vmul.f32 %v1551_v26, %v483_v13  ;;  %v269_v26 = vld [vmem:[%s2850_s4 + $0x48] sm:$0xff] }
 0x1e1   :  { %v843_v12 = vpop.permute.xlu1 %842  ;;  %v802_v52 = vadd.f32 %v789_v47, %v710_v44  ;;  %v1590_v44 = vld [vmem:[%s2850_s4 + $0x238] sm:$0xff] }
 0x1e2   :  { %v881_v54 = vmul.f32 %v1601_v17, %v843_v12  ;;  %v699_v17 = vmul.f32 %v1577_v37, %v667_v20  ;;  %v1579_v37 = vld [vmem:[%s2850_s4 + $0x1e0] sm:$0xff] }
 0x1e3   :  { %1955 = vset.pattern.permute.xlu1 %v2014_v46 }
 0x1e4   :  { %862 = vperm.xlu1 %1955, %v2300_v8   ;;  %v514_v8 = vmul.f32 %v1550_v30, %v479_v21  ;;  %v894_v53 = vadd.f32 %v881_v54, %v802_v52  ;;  %v1538_v21 = vld [vmem:[%s2850_s4 + $0x98] sm:$0xff] }
 0x1e6   :  { %v301_v62 = vpop.permute.xlu1 %300  ;;  %v986_v7 = vadd.f32 %v973_v1, %v894_v53  ;;  %v1617_v1 = vld [vmem:[%s2850_s4 + $0x310] sm:$0xff] }
 0x1e7   :  { %v343_v25 = vmul.f32 %v301_v62, %v265_v22  ;;  %v1564_v62 = vld [vmem:[%s2850_s4 + $0x168] sm:$0xff] }
 0x1e8   :  { %1957 = vset.pattern.permute.xlu1 %v2008_v19 }
 0x1e9   :  { %v435_v34 = vadd.f32 %v422_v23, %v343_v25  ;;  %325 = vperm.xlu1 %1957, %v2317_v16  }
 0x1eb   :  { %v527_v41 = vadd.f32 %v514_v8, %v435_v34  ;;  %v571_v42 = vpop.permute.xlu1 %570  ;;  %v1539_v34 = vld [vmem:[%s2850_s4 + $0xa0] sm:$0xff] }
 0x1ec   :  { %v606_v45 = vmul.f32 %v1563_v35, %v571_v42 }
 0x1ed   :  { %1959 = vset.pattern.permute.xlu1 %v2010_v33 }
 0x1ee   :  { %v619_v49 = vadd.f32 %v606_v45, %v527_v41  ;;  %498 = vperm.xlu1 %1959, %v2317_v16   ;;  %v1565_v45 = vld [vmem:[%s2850_s4 + $0x170] sm:$0xff] }
 0x1f0   :  { %v711_v5 = vadd.f32 %v698_v48, %v619_v49  ;;  %v755_v56 = vpop.permute.xlu1 %754  ;;  %v1578_v48 = vld [vmem:[%s2850_s4 + $0x1d8] sm:$0xff] }
 0x1f1   :  { %v790_v57 = vmul.f32 %v1589_v50, %v755_v56  ;;  %v1603_v56 = vld [vmem:[%s2850_s4 + $0x2a0] sm:$0xff] }
 0x1f2   :  { %1960 = vset.pattern.permute.xlu1 %v2012_v39 }
 0x1f3   :  { %v803_v24 = vadd.f32 %v790_v57, %v711_v5  ;;  %590 = vperm.xlu1 %1960, %v2317_v16   ;;  %v1604_v57 = vld [vmem:[%s2850_s4 + $0x2a8] sm:$0xff] }
 0x1f5   :  { %v895_v63 = vadd.f32 %v882_v51, %v803_v24  ;;  %v939_v0 = vpop.permute.xlu1 %938 }
 0x1f6   :  { %v974_v4 = vmul.f32 %v1615_v60, %v939_v0 }
 0x1f7   :  { %1961 = vset.pattern.permute.xlu1 %v2009_v32 }
 0x1f8   :  { %v987_v9 = vadd.f32 %v974_v4, %v895_v63  ;;  %682 = vperm.xlu1 %1961, %v2317_v16  }
 0x1fa   :  { %v306_v10 = vpop.permute.xlu1 %305  ;;  %v1829_v11 = vpack.c.bf16 %v987_v9, %v986_v7 }
 0x1fc   :  { %1830 = vmatpush3.bf16.msra.mxu1 %v1829_v11  ;;  %1963 = vset.pattern.permute.xlu1 %v2014_v46 }
 0x1fd   :  { %866 = vperm.xlu1 %1963, %v2317_v16   ;;  %1831 = vmatprep.subr.bf16.mxu1 %v2004_v3 }
 0x1ff   :  { %v391_v12 = vpop.permute.xlu1 %390 }
 0x200   :  { %v423_v22 = vmul.f32 %v1538_v21, %v391_v12 }
 0x201   :  { %1964 = vset.pattern.permute.xlu1 %v2011_v38  ;;  %v851_v38 = vpop.permute.xlu0 %850 }
 0x202   :  { %958 = vperm.xlu1 %1964, %v2317_v16   ;;  %v266_v16 = vld [vmem:[%s2850_s4 + $0x30] sm:$0xff]  ;;  %v883_v53 = vmul.f32 %v1603_v56, %v851_v38 }
 0x204   :  { %v575_v61 = vpop.permute.xlu1 %574 }
 0x205   :  { %v943_v30 = vpop.permute.xlu0 %942  ;;  %v607_v8 = vmul.f32 %v1564_v62, %v575_v61  ;;  %v1554_v62 = vld [vmem:[%s2850_s4 + $0x118] sm:$0xff] }
 0x206   :  { %1965 = vset.pattern.permute.xlu1 %v2008_v19 }
 0x207   :  { %330 = vperm.xlu1 %1965, %v2330_v27  }
 0x209   :  { %v759_v15 = vpop.permute.xlu1 %758  ;;  %v311_v35 = vpop.permute.xlu0 %310 }
 0x20a   :  { %v791_v52 = vmul.f32 %v1590_v44, %v759_v15  ;;  %v1567_v44 = vld [vmem:[%s2850_s4 + $0x180] sm:$0xff] }
 0x20b   :  { %1966 = vset.pattern.permute.xlu1 %v2007_v18  ;;  %v344_v18 = vmul.f32 %v306_v10, %v266_v16 }
 0x20c   :  { %410 = vperm.xlu1 %1966, %v2330_v27  }
 0x20d   :  { %v436_v29 = vadd.f32 %v423_v22, %v344_v18  ;;  %v316_v16 = vpop.permute.xlu0 %315  ;;  %v268_v18 = vld [vmem:[%s2850_s4 + $0x40] sm:$0xff] }
 0x20e   :  { %v395_v14 = vpop.permute.xlu1 %394 }
 0x20f   :  { %v528_v31 = vadd.f32 %v515_v28, %v436_v29  ;;  %v424_v41 = vmul.f32 %v1539_v34, %v395_v14  ;;  %v1553_v29 = vld [vmem:[%s2850_s4 + $0x110] sm:$0xff] }
 0x210   :  { %1969 = vset.pattern.permute.xlu1 %v2009_v32 }
 0x211   :  { %686 = vperm.xlu1 %1969, %v2330_v27   ;;  %v620_v40 = vadd.f32 %v607_v8, %v528_v31 }
 0x213   :  { %v487_v23 = vpop.permute.xlu1 %486  ;;  %v712_v50 = vadd.f32 %v699_v17, %v620_v40 }
 0x215   :  { %1970 = vset.pattern.permute.xlu1 %v2013_v43  ;;  %v804_v58 = vadd.f32 %v791_v52, %v712_v50  ;;  %v1580_v50 = vld [vmem:[%s2850_s4 + $0x1e8] sm:$0xff] }
 0x216   :  { %778 = vperm.xlu1 %1970, %v2330_v27   ;;  %v267_v27 = vld [vmem:[%s2850_s4 + $0x38] sm:$0xff] }
 0x217   :  { %v345_v42 = vmul.f32 %v311_v35, %v267_v27  ;;  %v896_v4 = vadd.f32 %v883_v53, %v804_v58  ;;  %v1566_v27 = vld [vmem:[%s2850_s4 + $0x178] sm:$0xff]  ;;  %v1605_v58 = vld [vmem:[%s2850_s4 + $0x2b0] sm:$0xff] }
 0x218   :  { %v579_v25 = vpop.permute.xlu1 %578  ;;  %v1606_v53 = vld [vmem:[%s2850_s4 + $0x2b8] sm:$0xff] }
 0x219   :  { %v608_v54 = vmul.f32 %v1565_v45, %v579_v25  ;;  %v346_v25 = vmul.f32 %v316_v16, %v268_v18 }
 0x21a   :  { %1972 = vset.pattern.permute.xlu1 %v2008_v19  ;;  %v1552_v19 = vld [vmem:[%s2850_s4 + $0x108] sm:$0xff] }
 0x21b   :  { %335 = vperm.xlu1 %1972, %v2366_v59   ;;  %v516_v47 = vmul.f32 %v1552_v19, %v487_v23 }
 0x21d   :  { %v671_v36 = vpop.permute.xlu1 %670 }
 0x21e   :  { %v700_v5 = vmul.f32 %v1578_v48, %v671_v36 }
 0x21f   :  { %1975 = vset.pattern.permute.xlu1 %v2010_v33  ;;  %v437_v33 = vadd.f32 %v424_v41, %v345_v42  ;;  %v1592_v42 = vld [vmem:[%s2850_s4 + $0x248] sm:$0xff] }
 0x220   :  { %506 = vperm.xlu1 %1975, %v2366_v59  }
 0x221   :  { %v529_v55 = vadd.f32 %v516_v47, %v437_v33 }
 0x222   :  { %v763_v49 = vpop.permute.xlu1 %762 }
 0x223   :  { %v621_v51 = vadd.f32 %v608_v54, %v529_v55  ;;  %v792_v24 = vmul.f32 %v1591_v2, %v763_v49  ;;  %v1593_v2 = vld [vmem:[%s2850_s4 + $0x250] sm:$0xff] }
 0x224   :  { %1976 = vset.pattern.permute.xlu1 %v2012_v39  ;;  %v1616_v39 = vld [vmem:[%s2850_s4 + $0x308] sm:$0xff] }
 0x225   :  { %598 = vperm.xlu1 %1976, %v2366_v59   ;;  %v713_v63 = vadd.f32 %v700_v5, %v621_v51  ;;  %v975_v10 = vmul.f32 %v1616_v39, %v943_v30  ;;  %v1619_v39 = vld [vmem:[%s2850_s4 + $0x320] sm:$0xff] }
 0x227   :  { %v855_v60 = vpop.permute.xlu1 %854  ;;  %v805_v7 = vadd.f32 %v792_v24, %v713_v63 }
 0x228   :  { %v884_v0 = vmul.f32 %v1604_v57, %v855_v60  ;;  %v1618_v60 = vld [vmem:[%s2850_s4 + $0x318] sm:$0xff] }
 0x229   :  { %1977 = vset.pattern.permute.xlu1 %v2009_v32  ;;  %v988_v32 = vadd.f32 %v975_v10, %v896_v4 }
 0x22a   :  { %690 = vperm.xlu1 %1977, %v2366_v59   ;;  %v897_v11 = vadd.f32 %v884_v0, %v805_v7 }
 0x22c   :  { %v947_v9 = vpop.permute.xlu1 %946 }
 0x22d   :  { %v976_v12 = vmul.f32 %v1617_v1, %v947_v9 }
 0x22e   :  { %1978 = vset.pattern.permute.xlu1 %v2013_v43  ;;  %v859_v43 = vpop.permute.xlu0 %858 }
 0x22f   :  { %v989_v61 = vadd.f32 %v976_v12, %v897_v11  ;;  %782 = vperm.xlu1 %1978, %v2366_v59   ;;  %v885_v63 = vmul.f32 %v1605_v58, %v859_v43  ;;  %v1607_v58 = vld [vmem:[%s2850_s4 + $0x2c0] sm:$0xff] }
 0x231   :  { %v399_v13 = vpop.permute.xlu1 %398  ;;  %v1832_v15 = vpack.c.bf16 %v989_v61, %v988_v32 }
 0x232   :  { %v403_v30 = vpop.permute.xlu0 %402 }
 0x233   :  { %1833 = vmatpush3.bf16.msra.mxu1 %v1832_v15  ;;  %1979 = vset.pattern.permute.xlu1 %v2014_v46  ;;  %v1540_v46 = vld [vmem:[%s2850_s4 + $0xa8] sm:$0xff] }
 0x234   :  { %874 = vperm.xlu1 %1979, %v2366_v59   ;;  %1834 = vmatprep.subr.bf16.mxu1 %v2004_v3  ;;  %v1541_v59 = vld [vmem:[%s2850_s4 + $0xb0] sm:$0xff]  ;;  %v425_v28 = vmul.f32 %v1540_v46, %v399_v13 }
 0x235   :  { %v426_v31 = vmul.f32 %v1541_v59, %v403_v30  ;;  %v270_v59 = vld [vmem:[%s2850_s4 + $0x50] sm:$0xff]  ;;  %v1555_v30 = vld [vmem:[%s2850_s4 + $0x120] sm:$0xff] }
 0x236   :  { %v491_v20 = vpop.permute.xlu1 %490  ;;  %v438_v19 = vadd.f32 %v425_v28, %v346_v25  ;;  %v587_v49 = vpop.permute.xlu0 %586  ;;  %v1568_v28 = vld [vmem:[%s2850_s4 + $0x188] sm:$0xff] }
 0x237   :  { %v517_v35 = vmul.f32 %v1553_v29, %v491_v20  ;;  %v610_v54 = vmul.f32 %v1567_v44, %v587_v49  ;;  %v1569_v44 = vld [vmem:[%s2850_s4 + $0x190] sm:$0xff]  ;;  %v1582_v49 = vld [vmem:[%s2850_s4 + $0x1f8] sm:$0xff] }
 0x239   :  { %v530_v17 = vadd.f32 %v517_v35, %v438_v19  ;;  %v1581_v35 = vld [vmem:[%s2850_s4 + $0x1f0] sm:$0xff] }
 0x23a   :  { %v955_v1 = vpop.permute.xlu0 %954 }
 0x23b   :  { %v583_v14 = vpop.permute.xlu1 %582  ;;  %v978_v12 = vmul.f32 %v1619_v39, %v955_v1 }
 0x23c   :  { %v609_v40 = vmul.f32 %v1566_v27, %v583_v14  ;;  %v1556_v27 = vld [vmem:[%s2850_s4 + $0x128] sm:$0xff] }
 0x23e   :  { %v622_v52 = vadd.f32 %v609_v40, %v530_v17 }
 0x240   :  { %v675_v21 = vpop.permute.xlu1 %674 }
 0x241   :  { %v701_v47 = vmul.f32 %v1579_v37, %v675_v21 }
 0x243   :  { %v714_v55 = vadd.f32 %v701_v47, %v622_v52 }
 0x245   :  { %v767_v38 = vpop.permute.xlu1 %766 }
 0x246   :  { %v793_v33 = vmul.f32 %v1592_v42, %v767_v38  ;;  %v407_v38 = vpop.permute.xlu0 %406 }
 0x248   :  { %v806_v51 = vadd.f32 %v793_v33, %v714_v55 }
 0x24a   :  { %v951_v22 = vpop.permute.xlu1 %950  ;;  %v898_v7 = vadd.f32 %v885_v63, %v806_v51  ;;  %v775_v43 = vpop.permute.xlu0 %774  ;;  %v1595_v51 = vld [vmem:[%s2850_s4 + $0x260] sm:$0xff] }
 0x24b   :  { %v977_v9 = vmul.f32 %v1618_v60, %v951_v22  ;;  %v1542_v22 = vld [vmem:[%s2850_s4 + $0xb8] sm:$0xff]  ;;  %v1608_v60 = vld [vmem:[%s2850_s4 + $0x2c8] sm:$0xff] }
 0x24d   :  { %v990_v32 = vadd.f32 %v977_v9, %v898_v7  ;;  %v1621_v7 = vld [vmem:[%s2850_s4 + $0x330] sm:$0xff] }
 0x24e   :  { %v503_v18 = vpop.permute.xlu0 %502 }
 0x24f   :  { %v321_v23 = vpop.permute.xlu1 %320  ;;  %v520_v17 = vmul.f32 %v1556_v27, %v503_v18  ;;  %v272_v18 = vld [vmem:[%s2850_s4 + $0x60] sm:$0x3] }
 0x250   :  { %v347_v8 = vmul.f32 %v321_v23, %v269_v26 }
 0x252   :  { %v439_v41 = vadd.f32 %v426_v31, %v347_v8  ;;  %v595_v26 = vpop.permute.xlu0 %594  ;;  %v271_v31 = vld [vmem:[%s2850_s4 + $0x58] sm:$0xff]  ;;  %v1543_v8 = vld [vmem:[%s2850_s4 + $0xc0] sm:$0xff] }
 0x253   :  { %v612_v52 = vmul.f32 %v1569_v44, %v595_v26  ;;  %v1609_v44 = vld [vmem:[%s2850_s4 + $0x2d0] sm:$0x3] }
 0x254   :  { %v495_v34 = vpop.permute.xlu1 %494 }
 0x255   :  { %v518_v36 = vmul.f32 %v1554_v62, %v495_v34  ;;  %v427_v62 = vmul.f32 %v1542_v22, %v407_v38  ;;  %v1557_v22 = vld [vmem:[%s2850_s4 + $0x130] sm:$0x3] }
 0x257   :  { %v531_v48 = vadd.f32 %v518_v36, %v439_v41  ;;  %v871_v36 = vpop.permute.xlu0 %870 }
 0x259   :  { %v679_v45 = vpop.permute.xlu1 %678  ;;  %v623_v5 = vadd.f32 %v610_v54, %v531_v48 }
 0x25a   :  { %v702_v56 = vmul.f32 %v1580_v50, %v679_v45 }
 0x25b   :  { %v415_v55 = vpop.permute.xlu0 %414 }
 0x25c   :  { %v715_v0 = vadd.f32 %v702_v56, %v623_v5 }
 0x25e   :  { %v771_v57 = vpop.permute.xlu1 %770 }
 0x25f   :  { %v794_v24 = vmul.f32 %v1593_v2, %v771_v57  ;;  %v1594_v2 = vld [vmem:[%s2850_s4 + $0x258] sm:$0xff]  ;;  %v963_v9 = vpop.permute.xlu0 %962 }
 0x261   :  { %v807_v10 = vadd.f32 %v794_v24, %v715_v0  ;;  %v795_v24 = vmul.f32 %v1594_v2, %v775_v43 }
 0x263   :  { %v863_v4 = vpop.permute.xlu1 %862 }
 0x264   :  { %v886_v11 = vmul.f32 %v1606_v53, %v863_v4  ;;  %v1620_v53 = vld [vmem:[%s2850_s4 + $0x328] sm:$0xff] }
 0x266   :  { %v899_v61 = vadd.f32 %v886_v11, %v807_v10  ;;  %v888_v10 = vmul.f32 %v1608_v60, %v871_v36 }
 0x268   :  { %v991_v13 = vadd.f32 %v978_v12, %v899_v61  ;;  %v326_v15 = vpop.permute.xlu1 %325 }
 0x269   :  { %v348_v25 = vmul.f32 %v326_v15, %v270_v59 }
 0x26a   :  { %v1835_v20 = vpack.c.bf16 %v991_v13, %v990_v32  ;;  %v980_v32 = vmul.f32 %v1621_v7, %v963_v9 }
 0x26b   :  { %v440_v19 = vadd.f32 %v427_v62, %v348_v25 }
 0x26c   :  { %1836 = vmatpush3.bf16.msra.mxu1 %v1835_v20 }
 0x26d   :  { %v499_v14 = vpop.permute.xlu1 %498  ;;  %1837 = vmatprep.subr.bf16.mxu1 %v2004_v3 }
 0x26e   :  { %v519_v34 = vmul.f32 %v1555_v30, %v499_v14 }
 0x270   :  { %v532_v45 = vadd.f32 %v519_v34, %v440_v19  ;;  %v1596_v34 = vld [vmem:[%s2850_s4 + $0x268] sm:$0x3] }
 0x272   :  { %v591_v21 = vpop.permute.xlu1 %590 }
 0x273   :  { %v611_v40 = vmul.f32 %v1568_v28, %v591_v21  ;;  %v1583_v28 = vld [vmem:[%s2850_s4 + $0x200] sm:$0x3] }
 0x275   :  { %v624_v50 = vadd.f32 %v611_v40, %v532_v45 }
 0x277   :  { %v683_v16 = vpop.permute.xlu1 %682 }
 0x278   :  { %v703_v47 = vmul.f32 %v1581_v35, %v683_v16  ;;  %v995_v16 = vlaneseq }
 0x27a   :  { %v716_v5 = vadd.f32 %v703_v47, %v624_v50  ;;  %v998_v27 = vand.u32 127, %v995_v16  ;;  %v967_v47 = vpop.permute.xlu0 %966 }
 0x27c   :  { %v867_v23 = vpop.permute.xlu1 %866  ;;  %v808_v0 = vadd.f32 %v795_v24, %v716_v5  ;;  %v1092_v5 = vld [vmem:[%s2852_s6] sm:$0xff]  ;;  %v1095_v24 = vld [vmem:[%s2852_s6 + $0x18] sm:$0xff] }
 0x27d   :  { %v887_v39 = vmul.f32 %v1607_v58, %v867_v23  ;;  %v1544_v23 = vld [vmem:[%s2850_s4 + $0xc8] sm:$0x3] }
 0x27e   :  { %v429_v59 = vmul.f32 %v1544_v23, %v415_v55  ;;  %v1096_v55 = vld [vmem:[%s2853_s7] sm:$0xf] }
 0x27f   :  { %v900_v61 = vadd.f32 %v887_v39, %v808_v0  ;;  %v1623_v0 = vld [vmem:[%s2851_s5] ss:$0 sm:$0xff] }
 0x281   :  { %v959_v46 = vpop.permute.xlu1 %958 }
 0x282   :  { %v979_v11 = vmul.f32 %v1620_v53, %v959_v46  ;;  %v996_v46 = vshrl.u32 %v995_v16, 7  ;;  %v1257_v53 = vld [vmem:[%s2855_s9] sm:$0xff] }
 0x283   :  { %v1629_v16 = vld [vmem:[%s2854_s8] ss:$0 sm:$0xff] }
 0x284   :  { %v992_v20 = vadd.f32 %v979_v11, %v900_v61  ;;  %v1001_v25 = vadd.s32 1, %v996_v46  ;;  %v999_v19 = vmul.u32 49, %v996_v46  ;;  %v1259_v11 = vld [vmem:[%s2855_s9 + $0x10] sm:$0xff]  ;;  %v1342_v46 = vld [vmem:[%s2857_s11 + $0x8] sm:$0xff] }
 0x286   :  { %v331_v29 = vpop.permute.xlu1 %330  ;;  %v1002_v40 = vmul.u32 49, %v1001_v25  ;;  %vm1000_vm3 = vcmp.ge.s32.totalorder %v998_v27, %v999_v19  ;;  %v1630_v25 = vld [vmem:[%s2856_s10] ss:$0 sm:$0xff] }
 0x287   :  { %v349_v41 = vmul.f32 %v331_v29, %v271_v31  ;;  %v1570_v29 = vld [vmem:[%s2850_s4 + $0x198] sm:$0x3] }
 0x288   :  { %vm1003_vm4 = vcmp.lt.s32.totalorder %v998_v27, %v1002_v40  ;;  %v1633_v27 = vld [vmem:[%s2859_s13] ss:$0 sm:$0xff] }
 0x289   :  { %vm1004_vm5 = vmand %vm1000_vm3, %vm1003_vm4 }
 0x28a   :  { %v1005_v2 = vsel %vm1004_vm5, 1.0, %v2006_v6 }
 0x28b   :  { %v411_v37 = vpop.permute.xlu1 %410 }
 0x28c   :  { %v428_v42 = vmul.f32 %v1543_v8, %v411_v37 }
 0x28e   :  { %v441_v48 = vadd.f32 %v428_v42, %v349_v41 }
 0x290   :  { %v533_v33 = vadd.f32 %v520_v17, %v441_v48  ;;  %v687_v54 = vpop.permute.xlu1 %686  ;;  %v1622_v17 = vld [vmem:[%s2850_s4 + $0x338] sm:$0x3] }
 0x291   :  { %v704_v57 = vmul.f32 %v1582_v49, %v687_v54 }
 0x292   :  { %v625_v56 = vadd.f32 %v612_v52, %v533_v33  ;;  %v981_v52 = vmul.f32 %v1622_v17, %v967_v47 }
 0x294   :  { %v717_v1 = vadd.f32 %v704_v57, %v625_v56  ;;  %v1093_v56 = vld [vmem:[%s2852_s6 + $0x8] sm:$0xff]  ;;  %v1091_v57 = vld [vmem:[%s2847_s1] sm:$0x3] }
 0x295   :  { %v779_v63 = vpop.permute.xlu1 %778  ;;  %v1841_v58 = vpack.c.bf16 %v1093_v56, %v1092_v5 }
 0x296   :  { %v796_v4 = vmul.f32 %v1595_v51, %v779_v63  ;;  %v1094_v51 = vld [vmem:[%s2852_s6 + $0x10] sm:$0xff]  ;;  %v1258_v63 = vld [vmem:[%s2855_s9 + $0x8] sm:$0xff]  ;;  %s1980_s6 = scalar_lea.vmem %s1510_s27, 32 }
 0x297   :  { %v1844_v60 = vpack.c.bf16 %v1095_v24, %v1094_v51  ;;  %p1981_p0 = scmp.ne.s32.totalorder %s1510_s27, %s1980_s6  ;;  %p1986_p2 = scmp.lt.s32.totalorder %s1980_s6, %s1980_s6 }
 0x298   :  { %v809_v12 = vadd.f32 %v796_v4, %v717_v1  ;;  %v1847_v1 = vpack.c.bf16 %v1258_v63, %v1257_v53 }
 0x299   :  { %p1987_p3 = por %p1986_p2, %p1985_p1 }
 0x29a   :  { %v901_v13 = vadd.f32 %v888_v10, %v809_v12  ;;  %v336_v15 = vpop.permute.xlu1 %335  ;;  %v1260_v12 = vld [vmem:[%s2855_s9 + $0x18] sm:$0xff] }
 0x29b   :  { %v350_v26 = vmul.f32 %v336_v15, %v272_v18  ;;  %v1850_v61 = vpack.c.bf16 %v1260_v12, %v1259_v11  ;;  %v1419_v15 = vld [vmem:[%s2858_s12 + $0x10] sm:$0xff]  ;;  %v1341_v18 = vld [vmem:[%s2857_s11] sm:$0xff]  ;;  %p1988_p4 = pnand %p1987_p3, %p1981_p0 }
 0x29c   :  { %v993_v14 = vadd.f32 %v980_v32, %v901_v13  ;;  %v1417_v32 = vld [vmem:[%s2858_s12] sm:$0xff]  ;;  %v1418_v13 = vld [vmem:[%s2858_s12 + $0x8] sm:$0xff] }
 0x29d   :  { %v442_v31 = vadd.f32 %v429_v59, %v350_v26  ;;  %v1853_v59 = vpack.c.bf16 %v1342_v46, %v1341_v18 }
 0x29e   :  { %v1838_v21 = vpack.c.bf16 %v993_v14, %v992_v20  ;;  %v1859_v20 = vpack.c.bf16 %v1418_v13, %v1417_v32  ;;  %v1420_v14 = vld [vmem:[%s2858_s12 + $0x18] sm:$0xff] }
 0x29f   :  { %v507_v38 = vpop.permute.xlu1 %506 }
 0x2a0   :  { %1839 = vmatpush3.bf16.msra.mxu1 %v1838_v21  ;;  %v521_v62 = vmul.f32 %v1557_v22, %v507_v38  ;;  %1860 = vmatpush3.bf16.msra.mxu0 %v1859_v20  ;;  %v1862_v21 = vpack.c.bf16 %v1420_v14, %v1419_v15 }
 0x2a1   :  { %1762 = vmatprep.subr.mxu1 %v2006_v6  ;;  %1861 = vmatprep.subr.bf16.mxu0 %v2004_v3 }
 0x2a2   :  { %v534_v35 = vadd.f32 %v521_v62, %v442_v31 }
 0x2a4   :  { %v599_v43 = vpop.permute.xlu1 %598  ;;  %1863 = vmatpush3.bf16.msra.mxu0 %v1862_v21 }
 0x2a5   :  { %v613_v8 = vmul.f32 %v1570_v29, %v599_v43  ;;  %v1343_v29 = vld [vmem:[%s2857_s11 + $0x10] sm:$0xff] }
 0x2a7   :  { %v626_v41 = vadd.f32 %v613_v8, %v534_v35 }
 0x2a9   :  { %v691_v30 = vpop.permute.xlu1 %690 }
 0x2aa   :  { %v705_v36 = vmul.f32 %v1583_v28, %v691_v30  ;;  %v1344_v30 = vld [vmem:[%s2857_s11 + $0x18] sm:$0xff] }
 0x2ab   :  { %v1856_v62 = vpack.c.bf16 %v1344_v30, %v1343_v29 }
 0x2ac   :  { %v718_v45 = vadd.f32 %v705_v36, %v626_v41 }
 0x2ae   :  { %v783_v37 = vpop.permute.xlu1 %782 }
 0x2af   :  { %v797_v42 = vmul.f32 %v1596_v34, %v783_v37 }
 0x2b1   :  { %v810_v49 = vadd.f32 %v797_v42, %v718_v45 }
 0x2b3   :  { %v875_v48 = vpop.permute.xlu1 %874 }
 0x2b4   :  { %v889_v50 = vmul.f32 %v1609_v44, %v875_v48 }
 0x2b6   :  { %v902_v33 = vadd.f32 %v889_v50, %v810_v49 }
 0x2b8   :  { %v994_v54 = vadd.f32 %v981_v52, %v902_v33 }
 0x2ba   :  { %1763 = vmatpush3.msk.msra.mxu1 %vm1017_vm6, %v994_v54 }
 0x2bb   :  { %1765 = vmatmul.mubr.msk.f32.vlgmr.msra.gmra.mrb[0].mxu1 %vm1013_vm7, %v1005_v2  ;;  %1767 = vmatprep.subr.mxu1 %v2006_v6 }
 0x2bc   :  { %1768 = vmatpush3.msk.msra.mxu1 %vm113_vm1, %v1096_v55  ;;  %1769 = vmatprep.mubr.msk.f32.mxu1 %vm2005_vm0, %v2006_v6 }
 0x2bd   :  { %1840 = vmatprep.subr.bf16.mxu1 %v2004_v3 }
 0x2bf   :  { %1770 = vmatmul.mubr.msk.f32.vlgmr.msra.gmra.mrb[2].mxu1 %vm1097_vm8, %v1091_v57 }
 0x2c0   :  { %1842 = vmatpush3.bf16.msra.mxu1 %v1841_v58  ;;  %1780 = vmatprep.mubr.msk.f32.mxu1 %vm2005_vm0, %v2006_v6 }
 0x2c1   :  { %1843 = vmatprep.subr.bf16.mxu1 %v2004_v3 }
 0x2c4   :  { %1845 = vmatpush3.bf16.msra.mxu1 %v1844_v60 }
 0x2c5   :  { %1846 = vmatprep.subr.bf16.mxu1 %v2004_v3 }
 0x38e   :  { %v1087_v39 = vpop.f32.mrb[0].mxu1 }
 0x38f   :  { %v1088_v4 = vadd.f32 %v1623_v0, %v1087_v39  ;;  %v1766_v7 = vpop.f32.mrb[1].mxu1 }
 0x391   :  { %1781 = vmatmul.mubr.msk.f32.vlgmr.msra.gmra.mrb[4].mxu1 %vm1174_vm9, %v1088_v4 }
 0x392   :  { %v1170_v9 = vpop.f32.mrb[2].mxu1  ;;  %1848 = vmatpush3.bf16.msra.mxu1 %v1847_v1  ;;  %1791 = vmatprep.mubr.msk.f32.mxu1 %vm2005_vm0, %v2006_v6 }
 0x393   :  { %v1771_v10 = vpop.f32.mrb[3].mxu1  ;;  %1849 = vmatprep.subr.bf16.mxu1 %v2004_v3 }
 0x396   :  { %1851 = vmatpush3.bf16.msra.mxu1 %v1850_v61 }
 0x397   :  { %1852 = vmatprep.subr.bf16.mxu1 %v2004_v3 }
 0x464   :  { %v1244_v38 = vpop.f32.mrb[4].mxu1 }
 0x465   :  { %v1245_v43 = vadd.f32 %v1244_v38, %v1170_v9  ;;  %v1782_v23 = vpop.f32.mrb[5].mxu1 }
 0x467   :  { %v1255_v22 = vadd.f32 %v1629_v16, %v1245_v43 }
 0x469   :  { %v1256_v26 = vmax.f32 %v1255_v22, 0.0 }
 0x46b   :  { %1792 = vmatmul.mubr.msk.f32.vlgmr.msra.gmra.mrb[6].mxu1 %vm1174_vm9, %v1256_v26 }
 0x46c   :  { %1854 = vmatpush3.bf16.msra.mxu1 %v1853_v59  ;;  %1802 = vmatprep.mubr.msk.f32.mxu1 %vm2005_vm0, %v2006_v6 }
 0x46d   :  { %1855 = vmatprep.subr.bf16.mxu1 %v2004_v3 }
 0x470   :  { %1857 = vmatpush3.bf16.msra.mxu1 %v1856_v62 }
 0x473   :  { %1803 = vmatmul.mubr.msk.f32.vlgmr.msra.gmra.mrb[6].mxu1 %vm1174_vm9, %v1088_v4 }
 0x546   :  { %v1411_v28 = vpop.f32.mrb[6].mxu1 }
 0x547   :  { %v1864_v31 = vadd.f32 %v1630_v25, %v1411_v28  ;;  %v1804_v8 = vpop.f32.mrb[7].mxu1 }
 0x549   :  { %v1416_v34 = vmax.f32 %v1864_v31, 0.0 }
 0x54b   :  { %1814 = vmatmul.mubr.msk.f32.vlgmr.msra.gmra.mrb[26].mxu0 %vm1174_vm9, %v1416_v34 }
 0x61e   :  { %v1497_v3 = vpop.f32.mrb[26].mxu0 }
 0x61f   :  { %v1498_v6 = vadd.f32 %v1633_v27, %v1497_v3  ;;  %v1815_v35 = vpop.f32.mrb[27].mxu0 }
 0x621   :  { %1502 = vst.msk [vmem:[#allocation2] sm:$0x3] %vm1501_vm10, %v1498_v6 }
 0x622   :  { %1991 = shalt.err (!%p1988_p4)
}
 0x623   :  { %s1992_s5 = scalar_lea.hbm %s2860_s14, 32 }
 0x624   :  { %p1993_p5 = scmp.ne.s32.totalorder %s2860_s14, %s1992_s5  ;;  %p1996_p6 = scmp.lt.u32.totalorder %s1992_s5, %s2860_s14 }
 0x626   :  { %p1998_p7 = pnand %p1996_p6, %p1993_p5 }
 0x628   :  { %2001 = shalt.err (!%p1998_p7)
}
 0x629   :  { %1512 = dma.vmem_to_hbm [thread:$0]  %s1510_s27, 32, %s2860_s14, [#allocation3]  }
 0x62a   :  { %2002 = dma.done.wait [#allocation3], 32  }
 0x62b   :  { %2003 = vsyncadd [#allocation3], 4294967264 }
 0x62c   :  { %1516 = vsyncpa [#allocation3], 1 }

</bundles_post_ra>
